<compile_context>
chip_gen: v5e
topology: v5e:2x2
jax: 0.10.0
libtpu: 0.0.40
codegen_flags: <defaults>
</compile_context>

<pallas_src>
import functools

import jax
import jax.numpy as jnp
from jax import lax
from jax.experimental import pallas as pl
from jax.experimental.pallas import tpu as pltpu


_MX_LIM = 100.0      # module's self.mx_lim
_MN_LIM = -100.0     # module's self.mn_lim
_POS_SENT = 1e30     # "never pick" sentinel for the bottom-k (positives) stream
_NEG_SENT = -1e30    # "never pick" sentinel for the top-k (negatives) stream
_BIG_I = 2 ** 30     # int sentinel for first-occurrence tie-break
_BUF = 128           # lane width of persistent candidate buffers (one vreg row)


def _triplet_ohnm_kernel(out_ref, tgt_ref, loss_ref,
                         bufp_ref, bufns_ref, bufno_ref, *,
                         n_labels, lane_tile, bt, num_p, num_n,
                         margin, use_diagonal, mask_tail):
    j = pl.program_id(1)          # label tile (reduction / streaming axis)

    @pl.when(j == 0)
    def _():
        bufp_ref[...] = jnp.full_like(bufp_ref, _POS_SENT)
        bufns_ref[...] = jnp.full_like(bufns_ref, _NEG_SENT)
        bufno_ref[...] = jnp.zeros_like(bufno_ref)

    x = out_ref[...].astype(jnp.float32)          # (bt, lane_tile)
    t = tgt_ref[...].astype(jnp.float32)

    col = None
    in_range = None
    if mask_tail or use_diagonal:
        col = j * lane_tile + lax.broadcasted_iota(jnp.int32, (bt, lane_tile), 1)
    if mask_tail:
        in_range = col < n_labels                 # mask OOB tail of last tile

    # ---- candidates for the positive (bottom-k) stream ----
    if use_diagonal:
        row = pl.program_id(0) * bt + lax.broadcasted_iota(
            jnp.int32, (bt, lane_tile), 0)
        on_diag = col == row
        if mask_tail:
            on_diag = jnp.logical_and(on_diag, in_range)
        p_tile = jnp.where(on_diag, x, _POS_SENT)
    else:
        is_pos = t == 1.0
        if mask_tail:
            p_tile = jnp.where(jnp.logical_and(is_pos, in_range), x,
                               jnp.where(in_range, _MX_LIM, _POS_SENT))
        else:
            p_tile = jnp.where(is_pos, x, _MX_LIM)

    # ---- candidates for the negative (top-k) stream (carry raw output) ----
    n_sim = jnp.where(t == 1.0, _MN_LIM, x)
    if mask_tail:
        n_sim_tile = jnp.where(in_range, n_sim, _NEG_SENT)
        n_out_tile = jnp.where(in_range, x, 0.0)
    else:
        n_sim_tile = n_sim
        n_out_tile = x

    lane_b = lax.broadcasted_iota(jnp.int32, (bt, _BUF), 1)
    widx = lax.broadcasted_iota(jnp.int32, (bt, _BUF + lane_tile), 1)

    # ---- streaming bottom-k: hardest (lowest-similarity) positives ----
    work = jnp.concatenate([bufp_ref[...], p_tile], axis=1)
    new_p = jnp.full((bt, _BUF), _POS_SENT, jnp.float32)
    for kk in range(num_p):
        m = jnp.min(work, axis=1, keepdims=True)
        is_m = work == m
        first_i = jnp.min(jnp.where(is_m, widx, _BIG_I), axis=1, keepdims=True)
        first = widx == first_i               # remove exactly one tied entry
        new_p = jnp.where(lane_b == kk, m, new_p)
        work = jnp.where(first, _POS_SENT, work)
    bufp_ref[...] = new_p

    # ---- streaming top-k: hardest (highest-similarity) negatives ----
    wsim = jnp.concatenate([bufns_ref[...], n_sim_tile], axis=1)
    wout = jnp.concatenate([bufno_ref[...], n_out_tile], axis=1)
    new_ns = jnp.full((bt, _BUF), _NEG_SENT, jnp.float32)
    new_no = jnp.zeros((bt, _BUF), jnp.float32)
    for kk in range(num_n):
        m = jnp.max(wsim, axis=1, keepdims=True)
        is_m = wsim == m
        first_i = jnp.min(jnp.where(is_m, widx, _BIG_I), axis=1, keepdims=True)
        first = widx == first_i
        sel_out = jnp.max(jnp.where(first, wout, _NEG_SENT), axis=1, keepdims=True)
        new_ns = jnp.where(lane_b == kk, m, new_ns)
        new_no = jnp.where(lane_b == kk, sel_out, new_no)
        wsim = jnp.where(first, _NEG_SENT, wsim)
    bufns_ref[...] = new_ns
    bufno_ref[...] = new_no

    # ---- finalize on the last label tile: softmax-weighted triplet loss ----
    @pl.when(j == pl.num_programs(1) - 1)
    def _():
        n_valid = lane_b < num_n              # only first num_n lanes are real negatives
        sim_n = new_no                        # raw output values at hardest negatives
        total = jnp.zeros((bt, 1), jnp.float32)
        for p in range(num_p):
            sp = new_p[:, p:p + 1]                                # (bt, 1)
            l = jnp.maximum(sim_n - sp + margin, 0.0)
            l = jnp.where(n_valid, l, 0.0)
            prob = jnp.where(l == 0.0, _MN_LIM, l)
            prob = jnp.where(n_valid, prob, _NEG_SENT)
            pm = jnp.max(prob, axis=1, keepdims=True)
            e = jnp.exp(prob - pm)                                # invalid lanes -> 0
            w = e / jnp.sum(e, axis=1, keepdims=True)
            total = total + jnp.sum(w * l, axis=1, keepdims=True)
        loss_ref[...] = total                 # per-row partial sums for this batch tile


def triplet_margin_loss_ohnm_multi(output, target, *, margin=1.0,
                                   reduction="mean", num_positives=3,
                                   num_negatives=10, lane_tile=512):
    """Pallas-backed TripletMarginLossOHNMMulti.forward.

    output, target: [batch, output_size] float arrays (cosine sims / 0-1 labels).
    Returns a scalar (mean over B*num_p*num_n elements if reduction=='mean',
    otherwise the sum, matching the module's forward()).
    """
    assert output.shape == target.shape and output.ndim == 2
    B, N = output.shape
    use_diagonal = (B == N)
    num_p = 1 if use_diagonal else int(num_positives)
    num_n = int(num_negatives)
    assert 1 <= num_p <= _BUF and 1 <= num_n <= _BUF
    assert num_n <= N and num_p <= N, "topk k must not exceed output_size"

    # Batch tiling: largest multiple-of-8 divisor of B up to 128; else one full-B tile.
    if B % 8 == 0:
        bt = 8
        for cand in (128, 64, 32, 16):
            if B % cand == 0:
                bt = cand
                break
        bt = min(bt, B)
    else:
        bt = B
    grid_b = B // bt

    # Label tiling: lane-dense multiples of 128; ragged tail masked in-kernel.
    t = min(int(lane_tile), pl.cdiv(N, 128) * 128)
    t = max(t, 128)
    grid_l = pl.cdiv(N, t)
    mask_tail = (N % t) != 0

    kernel = functools.partial(
        _triplet_ohnm_kernel, n_labels=N, lane_tile=t, bt=bt,
        num_p=num_p, num_n=num_n, margin=float(margin),
        use_diagonal=use_diagonal, mask_tail=mask_tail)

    row_partials = pl.pallas_call(
        kernel,
        out_shape=jax.ShapeDtypeStruct((B, 1), jnp.float32),
        grid_spec=pltpu.PrefetchScalarGridSpec(
            num_scalar_prefetch=0,
            grid=(grid_b, grid_l),
            in_specs=[
                pl.BlockSpec((bt, t), lambda i, j: (i, j)),
                pl.BlockSpec((bt, t), lambda i, j: (i, j)),
            ],
            out_specs=pl.BlockSpec((bt, 1), lambda i, j: (i, 0)),
            scratch_shapes=[
                pltpu.VMEM((bt, _BUF), jnp.float32),   # bottom-k positive sims
                pltpu.VMEM((bt, _BUF), jnp.float32),   # top-k masked negative sims
                pltpu.VMEM((bt, _BUF), jnp.float32),   # raw output at those negatives
            ]),
        compiler_params=pltpu.CompilerParams(
            dimension_semantics=("parallel", "arbitrary")),
    )(output, target)

    total = jnp.sum(row_partials)
    if reduction == "mean":
        return total / jnp.float32(B * num_p * num_n)
    # forward() treats every non-'mean' reduction as a plain sum.
    return total


def _reference(output, target, *, margin=1.0, reduction="mean",
               num_positives=3, num_negatives=10):
    """Pure-JAX mirror of the PyTorch forward (for the correctness check)."""
    B, N = output.shape
    if B != N:
        sim_p_m = jnp.where(target == 1, output, _MX_LIM)
        _, idx = lax.top_k(-sim_p_m, num_positives)          # smallest k
        sim_p = jnp.take_along_axis(sim_p_m, idx, axis=1)
    else:
        sim_p = jnp.diagonal(output).reshape(B, 1)
    num_p = sim_p.shape[1]
    sim_m = jnp.where(target == 1, _MN_LIM, output)
    _, idx = lax.top_k(sim_m, num_negatives)                 # largest k
    sim_n = jnp.take_along_axis(output, idx, axis=1)
    sim_n = jnp.broadcast_to(sim_n[:, None, :], (B, num_p, num_negatives))
    l = jnp.maximum(sim_n - sim_p[:, :, None] + margin, 0.0)
    prob = jnp.where(l == 0.0, _MN_LIM, l)
    l = jax.nn.softmax(prob, axis=-1) * l
    return l.mean() if reduction == "mean" else l.sum()


if __name__ == "__main__":
    key = jax.random.PRNGKey(0)
    kx, ky, kx2, ky2 = jax.random.split(key, 4)

    # Case 1: general (B != N) path, multi-tile label streaming + ragged tail.
    batch, output_size = 8, 300
    x = jax.random.normal(kx, (batch, output_size), dtype=jnp.float32)
    y = (jax.random.uniform(ky, (batch, output_size)) < 0.05).astype(jnp.float32)
    out = triplet_margin_loss_ohnm_multi(x, y, margin=1.0, reduction="mean",
                                         lane_tile=128)
    out = jax.block_until_ready(out)
    ref = _reference(x, y, margin=1.0, reduction="mean")
    assert jnp.allclose(out, ref, rtol=1e-5, atol=1e-6), (out, ref)

    # Case 2: square (B == N) diagonal path.
    n_sq = 16
    x2 = jax.random.normal(kx2, (n_sq, n_sq), dtype=jnp.float32)
    y2 = (jax.random.uniform(ky2, (n_sq, n_sq)) < 0.1).astype(jnp.float32)
    y2 = jnp.maximum(y2, jnp.eye(n_sq, dtype=jnp.float32))
    out2 = triplet_margin_loss_ohnm_multi(x2, y2, margin=1.0, reduction="mean")
    out2 = jax.block_until_ready(out2)
    ref2 = _reference(x2, y2, margin=1.0, reduction="mean")
    assert jnp.allclose(out2, ref2, rtol=1e-5, atol=1e-6), (out2, ref2)

    print("KERNEL_OK")
</pallas_src>

<mosaic_0001>
module attributes {stable_mosaic.version = 11 : i64} {
  func.func @_triplet_ohnm_kernel(%arg0: i32, %arg1: i32, %arg2: memref<8x128xf32, #tpu.memory_space<vmem>>, %arg3: memref<8x128xf32, #tpu.memory_space<vmem>>, %arg4: memref<8x1xf32, #tpu.memory_space<vmem>>, %arg5: memref<8x128xf32, #tpu.memory_space<vmem>>, %arg6: memref<8x128xf32, #tpu.memory_space<vmem>>, %arg7: memref<8x128xf32, #tpu.memory_space<vmem>>) attributes {dimension_semantics = [#tpu.dimension_semantics<parallel>, #tpu.dimension_semantics<arbitrary>], iteration_bounds = array<i64: 1, 3>, scalar_prefetch = 0 : i64, scratch_operands = 3 : i64, tpu.core_type = #tpu.core_type<tc>, window_params = [{transform_indices = @transform_0, window_bounds = array<i64: 8, 128>}, {transform_indices = @transform_1, window_bounds = array<i64: 8, 128>}, {transform_indices = @transform_2, window_bounds = array<i64: 8, 1>}]} {
    %c0_i32 = arith.constant 0 : i32
    %0 = arith.cmpi eq, %arg1, %c0_i32 : i32
    %1 = arith.extui %0 : i1 to i32
    %c0_i32_0 = arith.constant 0 : i32
    %2 = arith.cmpi ne, %1, %c0_i32_0 : i32
    scf.if %2 {
      %cst_108 = arith.constant 1.000000e+30 : f32
      %342 = vector.broadcast %cst_108 : f32 to vector<8x128xf32>
      %c0_109 = arith.constant 0 : index
      %c0_110 = arith.constant 0 : index
      %343 = vector.load %arg5[%c0_109, %c0_110] : memref<8x128xf32, #tpu.memory_space<vmem>>, vector<8x128xf32>
      tpu.vector_store %arg5[%c0_109, %c0_110], %342 {strides = array<i32>} : memref<8x128xf32, #tpu.memory_space<vmem>>, vector<8x128xf32>,
      %cst_111 = arith.constant -1.000000e+30 : f32
      %344 = vector.broadcast %cst_111 : f32 to vector<8x128xf32>
      %c0_112 = arith.constant 0 : index
      %c0_113 = arith.constant 0 : index
      %345 = vector.load %arg6[%c0_112, %c0_113] : memref<8x128xf32, #tpu.memory_space<vmem>>, vector<8x128xf32>
      tpu.vector_store %arg6[%c0_112, %c0_113], %344 {strides = array<i32>} : memref<8x128xf32, #tpu.memory_space<vmem>>, vector<8x128xf32>,
      %cst_114 = arith.constant 0.000000e+00 : f32
      %346 = vector.broadcast %cst_114 : f32 to vector<8x128xf32>
      %c0_115 = arith.constant 0 : index
      %c0_116 = arith.constant 0 : index
      %347 = vector.load %arg7[%c0_115, %c0_116] : memref<8x128xf32, #tpu.memory_space<vmem>>, vector<8x128xf32>
      tpu.vector_store %arg7[%c0_115, %c0_116], %346 {strides = array<i32>} : memref<8x128xf32, #tpu.memory_space<vmem>>, vector<8x128xf32>,
    } else {
    }
    %c0 = arith.constant 0 : index
    %c0_1 = arith.constant 0 : index
    %3 = vector.load %arg2[%c0, %c0_1] : memref<8x128xf32, #tpu.memory_space<vmem>>, vector<8x128xf32>
    %c0_2 = arith.constant 0 : index
    %c0_3 = arith.constant 0 : index
    %4 = vector.load %arg3[%c0_2, %c0_3] : memref<8x128xf32, #tpu.memory_space<vmem>>, vector<8x128xf32>
    %c128_i32 = arith.constant 128 : i32
    %5 = arith.muli %arg1, %c128_i32 : i32
    %6 = tpu.iota {dimensions = array<i32: 1>} : vector<8x128xi32>
    %7 = vector.broadcast %5 : i32 to vector<8x128xi32>
    %8 = arith.addi %7, %6 : vector<8x128xi32>
    %c300_i32 = arith.constant 300 : i32
    %9 = vector.broadcast %c300_i32 : i32 to vector<8x128xi32>
    %10 = arith.cmpi slt, %8, %9 : vector<8x128xi32>
    %cst = arith.constant 1.000000e+00 : f32
    %11 = vector.broadcast %cst : f32 to vector<8x128xf32>
    %12 = arith.cmpf oeq, %4, %11 : vector<8x128xf32>
    %13 = arith.andi %12, %10 : vector<8x128xi1>
    %cst_4 = arith.constant 1.000000e+02 : f32
    %cst_5 = arith.constant 1.000000e+30 : f32
    %14 = vector.broadcast %cst_4 : f32 to vector<8x128xf32>
    %15 = vector.broadcast %cst_5 : f32 to vector<8x128xf32>
    %16 = arith.select %10, %14, %15 : vector<8x128xi1>, vector<8x128xf32>
    %17 = arith.select %13, %3, %16 : vector<8x128xi1>, vector<8x128xf32>
    %cst_6 = arith.constant 1.000000e+00 : f32
    %18 = vector.broadcast %cst_6 : f32 to vector<8x128xf32>
    %19 = arith.cmpf oeq, %4, %18 : vector<8x128xf32>
    %cst_7 = arith.constant -1.000000e+02 : f32
    %20 = vector.broadcast %cst_7 : f32 to vector<8x128xf32>
    %21 = arith.select %19, %20, %3 : vector<8x128xi1>, vector<8x128xf32>
    %cst_8 = arith.constant -1.000000e+30 : f32
    %22 = vector.broadcast %cst_8 : f32 to vector<8x128xf32>
    %23 = arith.select %10, %21, %22 : vector<8x128xi1>, vector<8x128xf32>
    %cst_9 = arith.constant 0.000000e+00 : f32
    %24 = vector.broadcast %cst_9 : f32 to vector<8x128xf32>
    %25 = arith.select %10, %3, %24 : vector<8x128xi1>, vector<8x128xf32>
    %26 = tpu.iota {dimensions = array<i32: 1>} : vector<8x128xi32>
    %27 = tpu.iota {dimensions = array<i32: 1>} : vector<8x256xi32>
    %c0_10 = arith.constant 0 : index
    %c0_11 = arith.constant 0 : index
    %28 = vector.load %arg5[%c0_10, %c0_11] : memref<8x128xf32, #tpu.memory_space<vmem>>, vector<8x128xf32>
    %29 = tpu.concatenate %28, %17 in 1 : vector<8x128xf32>, vector<8x128xf32> -> vector<8x256xf32>
    %cst_12 = arith.constant 1.000000e+30 : f32
    %30 = vector.broadcast %cst_12 : f32 to vector<8x128xf32>
    %cst_13 = arith.constant dense<0x7F800000> : vector<8xf32>
    %31 = vector.multi_reduction <minimumf>, %29, %cst_13 [1] : vector<8x256xf32> to vector<8xf32>
    %32 = vector.shape_cast %31 : vector<8xf32> to vector<8x1xf32>
    %33 = vector.broadcast %32 : vector<8x1xf32> to vector<8x256xf32>
    %34 = arith.cmpf oeq, %29, %33 : vector<8x256xf32>
    %c1073741824_i32 = arith.constant 1073741824 : i32
    %35 = vector.broadcast %c1073741824_i32 : i32 to vector<8x256xi32>
    %36 = arith.select %34, %27, %35 : vector<8x256xi1>, vector<8x256xi32>
    %cst_14 = arith.constant dense<2147483647> : vector<8xi32>
    %37 = vector.multi_reduction <minsi>, %36, %cst_14 [1] : vector<8x256xi32> to vector<8xi32>
    %38 = vector.shape_cast %37 : vector<8xi32> to vector<8x1xi32>
    %39 = vector.broadcast %38 : vector<8x1xi32> to vector<8x256xi32>
    %40 = arith.cmpi eq, %27, %39 : vector<8x256xi32>
    %c0_i32_15 = arith.constant 0 : i32
    %41 = vector.broadcast %c0_i32_15 : i32 to vector<8x128xi32>
    %42 = arith.cmpi eq, %26, %41 : vector<8x128xi32>
    %43 = vector.shape_cast %32 : vector<8x1xf32> to vector<8x1xf32>
    %44 = vector.broadcast %43 : vector<8x1xf32> to vector<8x128xf32>
    %45 = arith.select %42, %44, %30 : vector<8x128xi1>, vector<8x128xf32>
    %cst_16 = arith.constant 1.000000e+30 : f32
    %46 = vector.broadcast %cst_16 : f32 to vector<8x256xf32>
    %47 = arith.select %40, %46, %29 : vector<8x256xi1>, vector<8x256xf32>
    %cst_17 = arith.constant dense<0x7F800000> : vector<8xf32>
    %48 = vector.multi_reduction <minimumf>, %47, %cst_17 [1] : vector<8x256xf32> to vector<8xf32>
    %49 = vector.shape_cast %48 : vector<8xf32> to vector<8x1xf32>
    %50 = vector.broadcast %49 : vector<8x1xf32> to vector<8x256xf32>
    %51 = arith.cmpf oeq, %47, %50 : vector<8x256xf32>
    %c1073741824_i32_18 = arith.constant 1073741824 : i32
    %52 = vector.broadcast %c1073741824_i32_18 : i32 to vector<8x256xi32>
    %53 = arith.select %51, %27, %52 : vector<8x256xi1>, vector<8x256xi32>
    %cst_19 = arith.constant dense<2147483647> : vector<8xi32>
    %54 = vector.multi_reduction <minsi>, %53, %cst_19 [1] : vector<8x256xi32> to vector<8xi32>
    %55 = vector.shape_cast %54 : vector<8xi32> to vector<8x1xi32>
    %56 = vector.broadcast %55 : vector<8x1xi32> to vector<8x256xi32>
    %57 = arith.cmpi eq, %27, %56 : vector<8x256xi32>
    %c1_i32 = arith.constant 1 : i32
    %58 = vector.broadcast %c1_i32 : i32 to vector<8x128xi32>
    %59 = arith.cmpi eq, %26, %58 : vector<8x128xi32>
    %60 = vector.shape_cast %49 : vector<8x1xf32> to vector<8x1xf32>
    %61 = vector.broadcast %60 : vector<8x1xf32> to vector<8x128xf32>
    %62 = arith.select %59, %61, %45 : vector<8x128xi1>, vector<8x128xf32>
    %cst_20 = arith.constant 1.000000e+30 : f32
    %63 = vector.broadcast %cst_20 : f32 to vector<8x256xf32>
    %64 = arith.select %57, %63, %47 : vector<8x256xi1>, vector<8x256xf32>
    %cst_21 = arith.constant dense<0x7F800000> : vector<8xf32>
    %65 = vector.multi_reduction <minimumf>, %64, %cst_21 [1] : vector<8x256xf32> to vector<8xf32>
    %66 = vector.shape_cast %65 : vector<8xf32> to vector<8x1xf32>
    %c2_i32 = arith.constant 2 : i32
    %67 = vector.broadcast %c2_i32 : i32 to vector<8x128xi32>
    %68 = arith.cmpi eq, %26, %67 : vector<8x128xi32>
    %69 = vector.shape_cast %66 : vector<8x1xf32> to vector<8x1xf32>
    %70 = vector.broadcast %69 : vector<8x1xf32> to vector<8x128xf32>
    %71 = arith.select %68, %70, %62 : vector<8x128xi1>, vector<8x128xf32>
    %c0_22 = arith.constant 0 : index
    %c0_23 = arith.constant 0 : index
    %72 = vector.load %arg5[%c0_22, %c0_23] : memref<8x128xf32, #tpu.memory_space<vmem>>, vector<8x128xf32>
    tpu.vector_store %arg5[%c0_22, %c0_23], %71 {strides = array<i32>} : memref<8x128xf32, #tpu.memory_space<vmem>>, vector<8x128xf32>,
    %c0_24 = arith.constant 0 : index
    %c0_25 = arith.constant 0 : index
    %73 = vector.load %arg6[%c0_24, %c0_25] : memref<8x128xf32, #tpu.memory_space<vmem>>, vector<8x128xf32>
    %74 = tpu.concatenate %73, %23 in 1 : vector<8x128xf32>, vector<8x128xf32> -> vector<8x256xf32>
    %c0_26 = arith.constant 0 : index
    %c0_27 = arith.constant 0 : index
    %75 = vector.load %arg7[%c0_26, %c0_27] : memref<8x128xf32, #tpu.memory_space<vmem>>, vector<8x128xf32>
    %76 = tpu.concatenate %75, %25 in 1 : vector<8x128xf32>, vector<8x128xf32> -> vector<8x256xf32>
    %cst_28 = arith.constant -1.000000e+30 : f32
    %77 = vector.broadcast %cst_28 : f32 to vector<8x128xf32>
    %cst_29 = arith.constant 0.000000e+00 : f32
    %78 = vector.broadcast %cst_29 : f32 to vector<8x128xf32>
    %cst_30 = arith.constant dense<0xFF800000> : vector<8xf32>
    %79 = vector.multi_reduction <maximumf>, %74, %cst_30 [1] : vector<8x256xf32> to vector<8xf32>
    %80 = vector.shape_cast %79 : vector<8xf32> to vector<8x1xf32>
    %81 = vector.broadcast %80 : vector<8x1xf32> to vector<8x256xf32>
    %82 = arith.cmpf oeq, %74, %81 : vector<8x256xf32>
    %c1073741824_i32_31 = arith.constant 1073741824 : i32
    %83 = vector.broadcast %c1073741824_i32_31 : i32 to vector<8x256xi32>
    %84 = arith.select %82, %27, %83 : vector<8x256xi1>, vector<8x256xi32>
    %cst_32 = arith.constant dense<2147483647> : vector<8xi32>
    %85 = vector.multi_reduction <minsi>, %84, %cst_32 [1] : vector<8x256xi32> to vector<8xi32>
    %86 = vector.shape_cast %85 : vector<8xi32> to vector<8x1xi32>
    %87 = vector.broadcast %86 : vector<8x1xi32> to vector<8x256xi32>
    %88 = arith.cmpi eq, %27, %87 : vector<8x256xi32>
    %cst_33 = arith.constant -1.000000e+30 : f32
    %89 = vector.broadcast %cst_33 : f32 to vector<8x256xf32>
    %90 = arith.select %88, %76, %89 : vector<8x256xi1>, vector<8x256xf32>
    %cst_34 = arith.constant dense<0xFF800000> : vector<8xf32>
    %91 = vector.multi_reduction <maximumf>, %90, %cst_34 [1] : vector<8x256xf32> to vector<8xf32>
    %92 = vector.shape_cast %91 : vector<8xf32> to vector<8x1xf32>
    %c0_i32_35 = arith.constant 0 : i32
    %93 = vector.broadcast %c0_i32_35 : i32 to vector<8x128xi32>
    %94 = arith.cmpi eq, %26, %93 : vector<8x128xi32>
    %95 = vector.shape_cast %80 : vector<8x1xf32> to vector<8x1xf32>
    %96 = vector.broadcast %95 : vector<8x1xf32> to vector<8x128xf32>
    %97 = arith.select %94, %96, %77 : vector<8x128xi1>, vector<8x128xf32>
    %c0_i32_36 = arith.constant 0 : i32
    %98 = vector.broadcast %c0_i32_36 : i32 to vector<8x128xi32>
    %99 = arith.cmpi eq, %26, %98 : vector<8x128xi32>
    %100 = vector.shape_cast %92 : vector<8x1xf32> to vector<8x1xf32>
    %101 = vector.broadcast %100 : vector<8x1xf32> to vector<8x128xf32>
    %102 = arith.select %99, %101, %78 : vector<8x128xi1>, vector<8x128xf32>
    %cst_37 = arith.constant -1.000000e+30 : f32
    %103 = vector.broadcast %cst_37 : f32 to vector<8x256xf32>
    %104 = arith.select %88, %103, %74 : vector<8x256xi1>, vector<8x256xf32>
    %cst_38 = arith.constant dense<0xFF800000> : vector<8xf32>
    %105 = vector.multi_reduction <maximumf>, %104, %cst_38 [1] : vector<8x256xf32> to vector<8xf32>
    %106 = vector.shape_cast %105 : vector<8xf32> to vector<8x1xf32>
    %107 = vector.broadcast %106 : vector<8x1xf32> to vector<8x256xf32>
    %108 = arith.cmpf oeq, %104, %107 : vector<8x256xf32>
    %c1073741824_i32_39 = arith.constant 1073741824 : i32
    %109 = vector.broadcast %c1073741824_i32_39 : i32 to vector<8x256xi32>
    %110 = arith.select %108, %27, %109 : vector<8x256xi1>, vector<8x256xi32>
    %cst_40 = arith.constant dense<2147483647> : vector<8xi32>
    %111 = vector.multi_reduction <minsi>, %110, %cst_40 [1] : vector<8x256xi32> to vector<8xi32>
    %112 = vector.shape_cast %111 : vector<8xi32> to vector<8x1xi32>
    %113 = vector.broadcast %112 : vector<8x1xi32> to vector<8x256xi32>
    %114 = arith.cmpi eq, %27, %113 : vector<8x256xi32>
    %cst_41 = arith.constant -1.000000e+30 : f32
    %115 = vector.broadcast %cst_41 : f32 to vector<8x256xf32>
    %116 = arith.select %114, %76, %115 : vector<8x256xi1>, vector<8x256xf32>
    %cst_42 = arith.constant dense<0xFF800000> : vector<8xf32>
    %117 = vector.multi_reduction <maximumf>, %116, %cst_42 [1] : vector<8x256xf32> to vector<8xf32>
    %118 = vector.shape_cast %117 : vector<8xf32> to vector<8x1xf32>
    %c1_i32_43 = arith.constant 1 : i32
    %119 = vector.broadcast %c1_i32_43 : i32 to vector<8x128xi32>
    %120 = arith.cmpi eq, %26, %119 : vector<8x128xi32>
    %121 = vector.shape_cast %106 : vector<8x1xf32> to vector<8x1xf32>
    %122 = vector.broadcast %121 : vector<8x1xf32> to vector<8x128xf32>
    %123 = arith.select %120, %122, %97 : vector<8x128xi1>, vector<8x128xf32>
    %c1_i32_44 = arith.constant 1 : i32
    %124 = vector.broadcast %c1_i32_44 : i32 to vector<8x128xi32>
    %125 = arith.cmpi eq, %26, %124 : vector<8x128xi32>
    %126 = vector.shape_cast %118 : vector<8x1xf32> to vector<8x1xf32>
    %127 = vector.broadcast %126 : vector<8x1xf32> to vector<8x128xf32>
    %128 = arith.select %125, %127, %102 : vector<8x128xi1>, vector<8x128xf32>
    %cst_45 = arith.constant -1.000000e+30 : f32
    %129 = vector.broadcast %cst_45 : f32 to vector<8x256xf32>
    %130 = arith.select %114, %129, %104 : vector<8x256xi1>, vector<8x256xf32>
    %cst_46 = arith.constant dense<0xFF800000> : vector<8xf32>
    %131 = vector.multi_reduction <maximumf>, %130, %cst_46 [1] : vector<8x256xf32> to vector<8xf32>
    %132 = vector.shape_cast %131 : vector<8xf32> to vector<8x1xf32>
    %133 = vector.broadcast %132 : vector<8x1xf32> to vector<8x256xf32>
    %134 = arith.cmpf oeq, %130, %133 : vector<8x256xf32>
    %c1073741824_i32_47 = arith.constant 1073741824 : i32
    %135 = vector.broadcast %c1073741824_i32_47 : i32 to vector<8x256xi32>
    %136 = arith.select %134, %27, %135 : vector<8x256xi1>, vector<8x256xi32>
    %cst_48 = arith.constant dense<2147483647> : vector<8xi32>
    %137 = vector.multi_reduction <minsi>, %136, %cst_48 [1] : vector<8x256xi32> to vector<8xi32>
    %138 = vector.shape_cast %137 : vector<8xi32> to vector<8x1xi32>
    %139 = vector.broadcast %138 : vector<8x1xi32> to vector<8x256xi32>
    %140 = arith.cmpi eq, %27, %139 : vector<8x256xi32>
    %cst_49 = arith.constant -1.000000e+30 : f32
    %141 = vector.broadcast %cst_49 : f32 to vector<8x256xf32>
    %142 = arith.select %140, %76, %141 : vector<8x256xi1>, vector<8x256xf32>
    %cst_50 = arith.constant dense<0xFF800000> : vector<8xf32>
    %143 = vector.multi_reduction <maximumf>, %142, %cst_50 [1] : vector<8x256xf32> to vector<8xf32>
    %144 = vector.shape_cast %143 : vector<8xf32> to vector<8x1xf32>
    %c2_i32_51 = arith.constant 2 : i32
    %145 = vector.broadcast %c2_i32_51 : i32 to vector<8x128xi32>
    %146 = arith.cmpi eq, %26, %145 : vector<8x128xi32>
    %147 = vector.shape_cast %132 : vector<8x1xf32> to vector<8x1xf32>
    %148 = vector.broadcast %147 : vector<8x1xf32> to vector<8x128xf32>
    %149 = arith.select %146, %148, %123 : vector<8x128xi1>, vector<8x128xf32>
    %c2_i32_52 = arith.constant 2 : i32
    %150 = vector.broadcast %c2_i32_52 : i32 to vector<8x128xi32>
    %151 = arith.cmpi eq, %26, %150 : vector<8x128xi32>
    %152 = vector.shape_cast %144 : vector<8x1xf32> to vector<8x1xf32>
    %153 = vector.broadcast %152 : vector<8x1xf32> to vector<8x128xf32>
    %154 = arith.select %151, %153, %128 : vector<8x128xi1>, vector<8x128xf32>
    %cst_53 = arith.constant -1.000000e+30 : f32
    %155 = vector.broadcast %cst_53 : f32 to vector<8x256xf32>
    %156 = arith.select %140, %155, %130 : vector<8x256xi1>, vector<8x256xf32>
    %cst_54 = arith.constant dense<0xFF800000> : vector<8xf32>
    %157 = vector.multi_reduction <maximumf>, %156, %cst_54 [1] : vector<8x256xf32> to vector<8xf32>
    %158 = vector.shape_cast %157 : vector<8xf32> to vector<8x1xf32>
    %159 = vector.broadcast %158 : vector<8x1xf32> to vector<8x256xf32>
    %160 = arith.cmpf oeq, %156, %159 : vector<8x256xf32>
    %c1073741824_i32_55 = arith.constant 1073741824 : i32
    %161 = vector.broadcast %c1073741824_i32_55 : i32 to vector<8x256xi32>
    %162 = arith.select %160, %27, %161 : vector<8x256xi1>, vector<8x256xi32>
    %cst_56 = arith.constant dense<2147483647> : vector<8xi32>
    %163 = vector.multi_reduction <minsi>, %162, %cst_56 [1] : vector<8x256xi32> to vector<8xi32>
    %164 = vector.shape_cast %163 : vector<8xi32> to vector<8x1xi32>
    %165 = vector.broadcast %164 : vector<8x1xi32> to vector<8x256xi32>
    %166 = arith.cmpi eq, %27, %165 : vector<8x256xi32>
    %cst_57 = arith.constant -1.000000e+30 : f32
    %167 = vector.broadcast %cst_57 : f32 to vector<8x256xf32>
    %168 = arith.select %166, %76, %167 : vector<8x256xi1>, vector<8x256xf32>
    %cst_58 = arith.constant dense<0xFF800000> : vector<8xf32>
    %169 = vector.multi_reduction <maximumf>, %168, %cst_58 [1] : vector<8x256xf32> to vector<8xf32>
    %170 = vector.shape_cast %169 : vector<8xf32> to vector<8x1xf32>
    %c3_i32 = arith.constant 3 : i32
    %171 = vector.broadcast %c3_i32 : i32 to vector<8x128xi32>
    %172 = arith.cmpi eq, %26, %171 : vector<8x128xi32>
    %173 = vector.shape_cast %158 : vector<8x1xf32> to vector<8x1xf32>
    %174 = vector.broadcast %173 : vector<8x1xf32> to vector<8x128xf32>
    %175 = arith.select %172, %174, %149 : vector<8x128xi1>, vector<8x128xf32>
    %c3_i32_59 = arith.constant 3 : i32
    %176 = vector.broadcast %c3_i32_59 : i32 to vector<8x128xi32>
    %177 = arith.cmpi eq, %26, %176 : vector<8x128xi32>
    %178 = vector.shape_cast %170 : vector<8x1xf32> to vector<8x1xf32>
    %179 = vector.broadcast %178 : vector<8x1xf32> to vector<8x128xf32>
    %180 = arith.select %177, %179, %154 : vector<8x128xi1>, vector<8x128xf32>
    %cst_60 = arith.constant -1.000000e+30 : f32
    %181 = vector.broadcast %cst_60 : f32 to vector<8x256xf32>
    %182 = arith.select %166, %181, %156 : vector<8x256xi1>, vector<8x256xf32>
    %cst_61 = arith.constant dense<0xFF800000> : vector<8xf32>
    %183 = vector.multi_reduction <maximumf>, %182, %cst_61 [1] : vector<8x256xf32> to vector<8xf32>
    %184 = vector.shape_cast %183 : vector<8xf32> to vector<8x1xf32>
    %185 = vector.broadcast %184 : vector<8x1xf32> to vector<8x256xf32>
    %186 = arith.cmpf oeq, %182, %185 : vector<8x256xf32>
    %c1073741824_i32_62 = arith.constant 1073741824 : i32
    %187 = vector.broadcast %c1073741824_i32_62 : i32 to vector<8x256xi32>
    %188 = arith.select %186, %27, %187 : vector<8x256xi1>, vector<8x256xi32>
    %cst_63 = arith.constant dense<2147483647> : vector<8xi32>
    %189 = vector.multi_reduction <minsi>, %188, %cst_63 [1] : vector<8x256xi32> to vector<8xi32>
    %190 = vector.shape_cast %189 : vector<8xi32> to vector<8x1xi32>
    %191 = vector.broadcast %190 : vector<8x1xi32> to vector<8x256xi32>
    %192 = arith.cmpi eq, %27, %191 : vector<8x256xi32>
    %cst_64 = arith.constant -1.000000e+30 : f32
    %193 = vector.broadcast %cst_64 : f32 to vector<8x256xf32>
    %194 = arith.select %192, %76, %193 : vector<8x256xi1>, vector<8x256xf32>
    %cst_65 = arith.constant dense<0xFF800000> : vector<8xf32>
    %195 = vector.multi_reduction <maximumf>, %194, %cst_65 [1] : vector<8x256xf32> to vector<8xf32>
    %196 = vector.shape_cast %195 : vector<8xf32> to vector<8x1xf32>
    %c4_i32 = arith.constant 4 : i32
    %197 = vector.broadcast %c4_i32 : i32 to vector<8x128xi32>
    %198 = arith.cmpi eq, %26, %197 : vector<8x128xi32>
    %199 = vector.shape_cast %184 : vector<8x1xf32> to vector<8x1xf32>
    %200 = vector.broadcast %199 : vector<8x1xf32> to vector<8x128xf32>
    %201 = arith.select %198, %200, %175 : vector<8x128xi1>, vector<8x128xf32>
    %c4_i32_66 = arith.constant 4 : i32
    %202 = vector.broadcast %c4_i32_66 : i32 to vector<8x128xi32>
    %203 = arith.cmpi eq, %26, %202 : vector<8x128xi32>
    %204 = vector.shape_cast %196 : vector<8x1xf32> to vector<8x1xf32>
    %205 = vector.broadcast %204 : vector<8x1xf32> to vector<8x128xf32>
    %206 = arith.select %203, %205, %180 : vector<8x128xi1>, vector<8x128xf32>
    %cst_67 = arith.constant -1.000000e+30 : f32
    %207 = vector.broadcast %cst_67 : f32 to vector<8x256xf32>
    %208 = arith.select %192, %207, %182 : vector<8x256xi1>, vector<8x256xf32>
    %cst_68 = arith.constant dense<0xFF800000> : vector<8xf32>
    %209 = vector.multi_reduction <maximumf>, %208, %cst_68 [1] : vector<8x256xf32> to vector<8xf32>
    %210 = vector.shape_cast %209 : vector<8xf32> to vector<8x1xf32>
    %211 = vector.broadcast %210 : vector<8x1xf32> to vector<8x256xf32>
    %212 = arith.cmpf oeq, %208, %211 : vector<8x256xf32>
    %c1073741824_i32_69 = arith.constant 1073741824 : i32
    %213 = vector.broadcast %c1073741824_i32_69 : i32 to vector<8x256xi32>
    %214 = arith.select %212, %27, %213 : vector<8x256xi1>, vector<8x256xi32>
    %cst_70 = arith.constant dense<2147483647> : vector<8xi32>
    %215 = vector.multi_reduction <minsi>, %214, %cst_70 [1] : vector<8x256xi32> to vector<8xi32>
    %216 = vector.shape_cast %215 : vector<8xi32> to vector<8x1xi32>
    %217 = vector.broadcast %216 : vector<8x1xi32> to vector<8x256xi32>
    %218 = arith.cmpi eq, %27, %217 : vector<8x256xi32>
    %cst_71 = arith.constant -1.000000e+30 : f32
    %219 = vector.broadcast %cst_71 : f32 to vector<8x256xf32>
    %220 = arith.select %218, %76, %219 : vector<8x256xi1>, vector<8x256xf32>
    %cst_72 = arith.constant dense<0xFF800000> : vector<8xf32>
    %221 = vector.multi_reduction <maximumf>, %220, %cst_72 [1] : vector<8x256xf32> to vector<8xf32>
    %222 = vector.shape_cast %221 : vector<8xf32> to vector<8x1xf32>
    %c5_i32 = arith.constant 5 : i32
    %223 = vector.broadcast %c5_i32 : i32 to vector<8x128xi32>
    %224 = arith.cmpi eq, %26, %223 : vector<8x128xi32>
    %225 = vector.shape_cast %210 : vector<8x1xf32> to vector<8x1xf32>
    %226 = vector.broadcast %225 : vector<8x1xf32> to vector<8x128xf32>
    %227 = arith.select %224, %226, %201 : vector<8x128xi1>, vector<8x128xf32>
    %c5_i32_73 = arith.constant 5 : i32
    %228 = vector.broadcast %c5_i32_73 : i32 to vector<8x128xi32>
    %229 = arith.cmpi eq, %26, %228 : vector<8x128xi32>
    %230 = vector.shape_cast %222 : vector<8x1xf32> to vector<8x1xf32>
    %231 = vector.broadcast %230 : vector<8x1xf32> to vector<8x128xf32>
    %232 = arith.select %229, %231, %206 : vector<8x128xi1>, vector<8x128xf32>
    %cst_74 = arith.constant -1.000000e+30 : f32
    %233 = vector.broadcast %cst_74 : f32 to vector<8x256xf32>
    %234 = arith.select %218, %233, %208 : vector<8x256xi1>, vector<8x256xf32>
    %cst_75 = arith.constant dense<0xFF800000> : vector<8xf32>
    %235 = vector.multi_reduction <maximumf>, %234, %cst_75 [1] : vector<8x256xf32> to vector<8xf32>
    %236 = vector.shape_cast %235 : vector<8xf32> to vector<8x1xf32>
    %237 = vector.broadcast %236 : vector<8x1xf32> to vector<8x256xf32>
    %238 = arith.cmpf oeq, %234, %237 : vector<8x256xf32>
    %c1073741824_i32_76 = arith.constant 1073741824 : i32
    %239 = vector.broadcast %c1073741824_i32_76 : i32 to vector<8x256xi32>
    %240 = arith.select %238, %27, %239 : vector<8x256xi1>, vector<8x256xi32>
    %cst_77 = arith.constant dense<2147483647> : vector<8xi32>
    %241 = vector.multi_reduction <minsi>, %240, %cst_77 [1] : vector<8x256xi32> to vector<8xi32>
    %242 = vector.shape_cast %241 : vector<8xi32> to vector<8x1xi32>
    %243 = vector.broadcast %242 : vector<8x1xi32> to vector<8x256xi32>
    %244 = arith.cmpi eq, %27, %243 : vector<8x256xi32>
    %cst_78 = arith.constant -1.000000e+30 : f32
    %245 = vector.broadcast %cst_78 : f32 to vector<8x256xf32>
    %246 = arith.select %244, %76, %245 : vector<8x256xi1>, vector<8x256xf32>
    %cst_79 = arith.constant dense<0xFF800000> : vector<8xf32>
    %247 = vector.multi_reduction <maximumf>, %246, %cst_79 [1] : vector<8x256xf32> to vector<8xf32>
    %248 = vector.shape_cast %247 : vector<8xf32> to vector<8x1xf32>
    %c6_i32 = arith.constant 6 : i32
    %249 = vector.broadcast %c6_i32 : i32 to vector<8x128xi32>
    %250 = arith.cmpi eq, %26, %249 : vector<8x128xi32>
    %251 = vector.shape_cast %236 : vector<8x1xf32> to vector<8x1xf32>
    %252 = vector.broadcast %251 : vector<8x1xf32> to vector<8x128xf32>
    %253 = arith.select %250, %252, %227 : vector<8x128xi1>, vector<8x128xf32>
    %c6_i32_80 = arith.constant 6 : i32
    %254 = vector.broadcast %c6_i32_80 : i32 to vector<8x128xi32>
    %255 = arith.cmpi eq, %26, %254 : vector<8x128xi32>
    %256 = vector.shape_cast %248 : vector<8x1xf32> to vector<8x1xf32>
    %257 = vector.broadcast %256 : vector<8x1xf32> to vector<8x128xf32>
    %258 = arith.select %255, %257, %232 : vector<8x128xi1>, vector<8x128xf32>
    %cst_81 = arith.constant -1.000000e+30 : f32
    %259 = vector.broadcast %cst_81 : f32 to vector<8x256xf32>
    %260 = arith.select %244, %259, %234 : vector<8x256xi1>, vector<8x256xf32>
    %cst_82 = arith.constant dense<0xFF800000> : vector<8xf32>
    %261 = vector.multi_reduction <maximumf>, %260, %cst_82 [1] : vector<8x256xf32> to vector<8xf32>
    %262 = vector.shape_cast %261 : vector<8xf32> to vector<8x1xf32>
    %263 = vector.broadcast %262 : vector<8x1xf32> to vector<8x256xf32>
    %264 = arith.cmpf oeq, %260, %263 : vector<8x256xf32>
    %c1073741824_i32_83 = arith.constant 1073741824 : i32
    %265 = vector.broadcast %c1073741824_i32_83 : i32 to vector<8x256xi32>
    %266 = arith.select %264, %27, %265 : vector<8x256xi1>, vector<8x256xi32>
    %cst_84 = arith.constant dense<2147483647> : vector<8xi32>
    %267 = vector.multi_reduction <minsi>, %266, %cst_84 [1] : vector<8x256xi32> to vector<8xi32>
    %268 = vector.shape_cast %267 : vector<8xi32> to vector<8x1xi32>
    %269 = vector.broadcast %268 : vector<8x1xi32> to vector<8x256xi32>
    %270 = arith.cmpi eq, %27, %269 : vector<8x256xi32>
    %cst_85 = arith.constant -1.000000e+30 : f32
    %271 = vector.broadcast %cst_85 : f32 to vector<8x256xf32>
    %272 = arith.select %270, %76, %271 : vector<8x256xi1>, vector<8x256xf32>
    %cst_86 = arith.constant dense<0xFF800000> : vector<8xf32>
    %273 = vector.multi_reduction <maximumf>, %272, %cst_86 [1] : vector<8x256xf32> to vector<8xf32>
    %274 = vector.shape_cast %273 : vector<8xf32> to vector<8x1xf32>
    %c7_i32 = arith.constant 7 : i32
    %275 = vector.broadcast %c7_i32 : i32 to vector<8x128xi32>
    %276 = arith.cmpi eq, %26, %275 : vector<8x128xi32>
    %277 = vector.shape_cast %262 : vector<8x1xf32> to vector<8x1xf32>
    %278 = vector.broadcast %277 : vector<8x1xf32> to vector<8x128xf32>
    %279 = arith.select %276, %278, %253 : vector<8x128xi1>, vector<8x128xf32>
    %c7_i32_87 = arith.constant 7 : i32
    %280 = vector.broadcast %c7_i32_87 : i32 to vector<8x128xi32>
    %281 = arith.cmpi eq, %26, %280 : vector<8x128xi32>
    %282 = vector.shape_cast %274 : vector<8x1xf32> to vector<8x1xf32>
    %283 = vector.broadcast %282 : vector<8x1xf32> to vector<8x128xf32>
    %284 = arith.select %281, %283, %258 : vector<8x128xi1>, vector<8x128xf32>
    %cst_88 = arith.constant -1.000000e+30 : f32
    %285 = vector.broadcast %cst_88 : f32 to vector<8x256xf32>
    %286 = arith.select %270, %285, %260 : vector<8x256xi1>, vector<8x256xf32>
    %cst_89 = arith.constant dense<0xFF800000> : vector<8xf32>
    %287 = vector.multi_reduction <maximumf>, %286, %cst_89 [1] : vector<8x256xf32> to vector<8xf32>
    %288 = vector.shape_cast %287 : vector<8xf32> to vector<8x1xf32>
    %289 = vector.broadcast %288 : vector<8x1xf32> to vector<8x256xf32>
    %290 = arith.cmpf oeq, %286, %289 : vector<8x256xf32>
    %c1073741824_i32_90 = arith.constant 1073741824 : i32
    %291 = vector.broadcast %c1073741824_i32_90 : i32 to vector<8x256xi32>
    %292 = arith.select %290, %27, %291 : vector<8x256xi1>, vector<8x256xi32>
    %cst_91 = arith.constant dense<2147483647> : vector<8xi32>
    %293 = vector.multi_reduction <minsi>, %292, %cst_91 [1] : vector<8x256xi32> to vector<8xi32>
    %294 = vector.shape_cast %293 : vector<8xi32> to vector<8x1xi32>
    %295 = vector.broadcast %294 : vector<8x1xi32> to vector<8x256xi32>
    %296 = arith.cmpi eq, %27, %295 : vector<8x256xi32>
    %cst_92 = arith.constant -1.000000e+30 : f32
    %297 = vector.broadcast %cst_92 : f32 to vector<8x256xf32>
    %298 = arith.select %296, %76, %297 : vector<8x256xi1>, vector<8x256xf32>
    %cst_93 = arith.constant dense<0xFF800000> : vector<8xf32>
    %299 = vector.multi_reduction <maximumf>, %298, %cst_93 [1] : vector<8x256xf32> to vector<8xf32>
    %300 = vector.shape_cast %299 : vector<8xf32> to vector<8x1xf32>
    %c8_i32 = arith.constant 8 : i32
    %301 = vector.broadcast %c8_i32 : i32 to vector<8x128xi32>
    %302 = arith.cmpi eq, %26, %301 : vector<8x128xi32>
    %303 = vector.shape_cast %288 : vector<8x1xf32> to vector<8x1xf32>
    %304 = vector.broadcast %303 : vector<8x1xf32> to vector<8x128xf32>
    %305 = arith.select %302, %304, %279 : vector<8x128xi1>, vector<8x128xf32>
    %c8_i32_94 = arith.constant 8 : i32
    %306 = vector.broadcast %c8_i32_94 : i32 to vector<8x128xi32>
    %307 = arith.cmpi eq, %26, %306 : vector<8x128xi32>
    %308 = vector.shape_cast %300 : vector<8x1xf32> to vector<8x1xf32>
    %309 = vector.broadcast %308 : vector<8x1xf32> to vector<8x128xf32>
    %310 = arith.select %307, %309, %284 : vector<8x128xi1>, vector<8x128xf32>
    %cst_95 = arith.constant -1.000000e+30 : f32
    %311 = vector.broadcast %cst_95 : f32 to vector<8x256xf32>
    %312 = arith.select %296, %311, %286 : vector<8x256xi1>, vector<8x256xf32>
    %cst_96 = arith.constant dense<0xFF800000> : vector<8xf32>
    %313 = vector.multi_reduction <maximumf>, %312, %cst_96 [1] : vector<8x256xf32> to vector<8xf32>
    %314 = vector.shape_cast %313 : vector<8xf32> to vector<8x1xf32>
    %315 = vector.broadcast %314 : vector<8x1xf32> to vector<8x256xf32>
    %316 = arith.cmpf oeq, %312, %315 : vector<8x256xf32>
    %c1073741824_i32_97 = arith.constant 1073741824 : i32
    %317 = vector.broadcast %c1073741824_i32_97 : i32 to vector<8x256xi32>
    %318 = arith.select %316, %27, %317 : vector<8x256xi1>, vector<8x256xi32>
    %cst_98 = arith.constant dense<2147483647> : vector<8xi32>
    %319 = vector.multi_reduction <minsi>, %318, %cst_98 [1] : vector<8x256xi32> to vector<8xi32>
    %320 = vector.shape_cast %319 : vector<8xi32> to vector<8x1xi32>
    %321 = vector.broadcast %320 : vector<8x1xi32> to vector<8x256xi32>
    %322 = arith.cmpi eq, %27, %321 : vector<8x256xi32>
    %cst_99 = arith.constant -1.000000e+30 : f32
    %323 = vector.broadcast %cst_99 : f32 to vector<8x256xf32>
    %324 = arith.select %322, %76, %323 : vector<8x256xi1>, vector<8x256xf32>
    %cst_100 = arith.constant dense<0xFF800000> : vector<8xf32>
    %325 = vector.multi_reduction <maximumf>, %324, %cst_100 [1] : vector<8x256xf32> to vector<8xf32>
    %326 = vector.shape_cast %325 : vector<8xf32> to vector<8x1xf32>
    %c9_i32 = arith.constant 9 : i32
    %327 = vector.broadcast %c9_i32 : i32 to vector<8x128xi32>
    %328 = arith.cmpi eq, %26, %327 : vector<8x128xi32>
    %329 = vector.shape_cast %314 : vector<8x1xf32> to vector<8x1xf32>
    %330 = vector.broadcast %329 : vector<8x1xf32> to vector<8x128xf32>
    %331 = arith.select %328, %330, %305 : vector<8x128xi1>, vector<8x128xf32>
    %c9_i32_101 = arith.constant 9 : i32
    %332 = vector.broadcast %c9_i32_101 : i32 to vector<8x128xi32>
    %333 = arith.cmpi eq, %26, %332 : vector<8x128xi32>
    %334 = vector.shape_cast %326 : vector<8x1xf32> to vector<8x1xf32>
    %335 = vector.broadcast %334 : vector<8x1xf32> to vector<8x128xf32>
    %336 = arith.select %333, %335, %310 : vector<8x128xi1>, vector<8x128xf32>
    %c0_102 = arith.constant 0 : index
    %c0_103 = arith.constant 0 : index
    %337 = vector.load %arg6[%c0_102, %c0_103] : memref<8x128xf32, #tpu.memory_space<vmem>>, vector<8x128xf32>
    tpu.vector_store %arg6[%c0_102, %c0_103], %331 {strides = array<i32>} : memref<8x128xf32, #tpu.memory_space<vmem>>, vector<8x128xf32>,
    %c0_104 = arith.constant 0 : index
    %c0_105 = arith.constant 0 : index
    %338 = vector.load %arg7[%c0_104, %c0_105] : memref<8x128xf32, #tpu.memory_space<vmem>>, vector<8x128xf32>
    tpu.vector_store %arg7[%c0_104, %c0_105], %336 {strides = array<i32>} : memref<8x128xf32, #tpu.memory_space<vmem>>, vector<8x128xf32>,
    %c2_i32_106 = arith.constant 2 : i32
    %339 = arith.cmpi eq, %arg1, %c2_i32_106 : i32
    %340 = arith.extui %339 : i1 to i32
    %c0_i32_107 = arith.constant 0 : i32
    %341 = arith.cmpi ne, %340, %c0_i32_107 : i32
    scf.if %341 {
      %c10_i32 = arith.constant 10 : i32
      %342 = vector.broadcast %c10_i32 : i32 to vector<8x128xi32>
      %343 = arith.cmpi slt, %26, %342 : vector<8x128xi32>
      %cst_108 = arith.constant 0.000000e+00 : f32
      %344 = vector.broadcast %cst_108 : f32 to vector<8x1xf32>
      %345 = vector.extract_strided_slice %71 {offsets = [0, 0], sizes = [8, 1], strides = [1, 1]} : vector<8x128xf32> to vector<8x1xf32>
      %346 = vector.broadcast %345 : vector<8x1xf32> to vector<8x128xf32>
      %347 = arith.subf %336, %346 : vector<8x128xf32>
      %cst_109 = arith.constant 1.000000e+00 : f32
      %348 = vector.broadcast %cst_109 : f32 to vector<8x128xf32>
      %349 = arith.addf %347, %348 : vector<8x128xf32>
      %cst_110 = arith.constant 0.000000e+00 : f32
      %350 = vector.broadcast %cst_110 : f32 to vector<8x128xf32>
      %351 = arith.maximumf %349, %350 : vector<8x128xf32>
      %cst_111 = arith.constant 0.000000e+00 : f32
      %352 = vector.broadcast %cst_111 : f32 to vector<8x128xf32>
      %353 = arith.select %343, %351, %352 : vector<8x128xi1>, vector<8x128xf32>
      %cst_112 = arith.constant 0.000000e+00 : f32
      %354 = vector.broadcast %cst_112 : f32 to vector<8x128xf32>
      %355 = arith.cmpf oeq, %353, %354 : vector<8x128xf32>
      %cst_113 = arith.constant -1.000000e+02 : f32
      %356 = vector.broadcast %cst_113 : f32 to vector<8x128xf32>
      %357 = arith.select %355, %356, %353 : vector<8x128xi1>, vector<8x128xf32>
      %cst_114 = arith.constant -1.000000e+30 : f32
      %358 = vector.broadcast %cst_114 : f32 to vector<8x128xf32>
      %359 = arith.select %343, %357, %358 : vector<8x128xi1>, vector<8x128xf32>
      %cst_115 = arith.constant dense<0xFF800000> : vector<8xf32>
      %360 = vector.multi_reduction <maximumf>, %359, %cst_115 [1] : vector<8x128xf32> to vector<8xf32>
      %361 = vector.shape_cast %360 : vector<8xf32> to vector<8x1xf32>
      %362 = vector.broadcast %361 : vector<8x1xf32> to vector<8x128xf32>
      %363 = arith.subf %359, %362 : vector<8x128xf32>
      %364 = math.exp %363 : vector<8x128xf32>
      %cst_116 = arith.constant dense<0.000000e+00> : vector<8xf32>
      %365 = vector.multi_reduction <add>, %364, %cst_116 [1] : vector<8x128xf32> to vector<8xf32>
      %366 = vector.shape_cast %365 : vector<8xf32> to vector<8x1xf32>
      %367 = vector.broadcast %366 : vector<8x1xf32> to vector<8x128xf32>
      %368 = arith.divf %364, %367 : vector<8x128xf32>
      %369 = arith.mulf %368, %353 : vector<8x128xf32>
      %cst_117 = arith.constant dense<0.000000e+00> : vector<8xf32>
      %370 = vector.multi_reduction <add>, %369, %cst_117 [1] : vector<8x128xf32> to vector<8xf32>
      %371 = vector.shape_cast %370 : vector<8xf32> to vector<8x1xf32>
      %372 = arith.addf %344, %371 : vector<8x1xf32>
      %373 = vector.extract_strided_slice %71 {offsets = [0, 1], sizes = [8, 1], strides = [1, 1]} : vector<8x128xf32> to vector<8x1xf32>
      %374 = vector.broadcast %373 : vector<8x1xf32> to vector<8x128xf32>
      %375 = arith.subf %336, %374 : vector<8x128xf32>
      %cst_118 = arith.constant 1.000000e+00 : f32
      %376 = vector.broadcast %cst_118 : f32 to vector<8x128xf32>
      %377 = arith.addf %375, %376 : vector<8x128xf32>
      %cst_119 = arith.constant 0.000000e+00 : f32
      %378 = vector.broadcast %cst_119 : f32 to vector<8x128xf32>
      %379 = arith.maximumf %377, %378 : vector<8x128xf32>
      %cst_120 = arith.constant 0.000000e+00 : f32
      %380 = vector.broadcast %cst_120 : f32 to vector<8x128xf32>
      %381 = arith.select %343, %379, %380 : vector<8x128xi1>, vector<8x128xf32>
      %cst_121 = arith.constant 0.000000e+00 : f32
      %382 = vector.broadcast %cst_121 : f32 to vector<8x128xf32>
      %383 = arith.cmpf oeq, %381, %382 : vector<8x128xf32>
      %cst_122 = arith.constant -1.000000e+02 : f32
      %384 = vector.broadcast %cst_122 : f32 to vector<8x128xf32>
      %385 = arith.select %383, %384, %381 : vector<8x128xi1>, vector<8x128xf32>
      %cst_123 = arith.constant -1.000000e+30 : f32
      %386 = vector.broadcast %cst_123 : f32 to vector<8x128xf32>
      %387 = arith.select %343, %385, %386 : vector<8x128xi1>, vector<8x128xf32>
      %cst_124 = arith.constant dense<0xFF800000> : vector<8xf32>
      %388 = vector.multi_reduction <maximumf>, %387, %cst_124 [1] : vector<8x128xf32> to vector<8xf32>
      %389 = vector.shape_cast %388 : vector<8xf32> to vector<8x1xf32>
      %390 = vector.broadcast %389 : vector<8x1xf32> to vector<8x128xf32>
      %391 = arith.subf %387, %390 : vector<8x128xf32>
      %392 = math.exp %391 : vector<8x128xf32>
      %cst_125 = arith.constant dense<0.000000e+00> : vector<8xf32>
      %393 = vector.multi_reduction <add>, %392, %cst_125 [1] : vector<8x128xf32> to vector<8xf32>
      %394 = vector.shape_cast %393 : vector<8xf32> to vector<8x1xf32>
      %395 = vector.broadcast %394 : vector<8x1xf32> to vector<8x128xf32>
      %396 = arith.divf %392, %395 : vector<8x128xf32>
      %397 = arith.mulf %396, %381 : vector<8x128xf32>
      %cst_126 = arith.constant dense<0.000000e+00> : vector<8xf32>
      %398 = vector.multi_reduction <add>, %397, %cst_126 [1] : vector<8x128xf32> to vector<8xf32>
      %399 = vector.shape_cast %398 : vector<8xf32> to vector<8x1xf32>
      %400 = arith.addf %372, %399 : vector<8x1xf32>
      %401 = vector.extract_strided_slice %71 {offsets = [0, 2], sizes = [8, 1], strides = [1, 1]} : vector<8x128xf32> to vector<8x1xf32>
      %402 = vector.broadcast %401 : vector<8x1xf32> to vector<8x128xf32>
      %403 = arith.subf %336, %402 : vector<8x128xf32>
      %cst_127 = arith.constant 1.000000e+00 : f32
      %404 = vector.broadcast %cst_127 : f32 to vector<8x128xf32>
      %405 = arith.addf %403, %404 : vector<8x128xf32>
      %cst_128 = arith.constant 0.000000e+00 : f32
      %406 = vector.broadcast %cst_128 : f32 to vector<8x128xf32>
      %407 = arith.maximumf %405, %406 : vector<8x128xf32>
      %cst_129 = arith.constant 0.000000e+00 : f32
      %408 = vector.broadcast %cst_129 : f32 to vector<8x128xf32>
      %409 = arith.select %343, %407, %408 : vector<8x128xi1>, vector<8x128xf32>
      %cst_130 = arith.constant 0.000000e+00 : f32
      %410 = vector.broadcast %cst_130 : f32 to vector<8x128xf32>
      %411 = arith.cmpf oeq, %409, %410 : vector<8x128xf32>
      %cst_131 = arith.constant -1.000000e+02 : f32
      %412 = vector.broadcast %cst_131 : f32 to vector<8x128xf32>
      %413 = arith.select %411, %412, %409 : vector<8x128xi1>, vector<8x128xf32>
      %cst_132 = arith.constant -1.000000e+30 : f32
      %414 = vector.broadcast %cst_132 : f32 to vector<8x128xf32>
      %415 = arith.select %343, %413, %414 : vector<8x128xi1>, vector<8x128xf32>
      %cst_133 = arith.constant dense<0xFF800000> : vector<8xf32>
      %416 = vector.multi_reduction <maximumf>, %415, %cst_133 [1] : vector<8x128xf32> to vector<8xf32>
      %417 = vector.shape_cast %416 : vector<8xf32> to vector<8x1xf32>
      %418 = vector.broadcast %417 : vector<8x1xf32> to vector<8x128xf32>
      %419 = arith.subf %415, %418 : vector<8x128xf32>
      %420 = math.exp %419 : vector<8x128xf32>
      %cst_134 = arith.constant dense<0.000000e+00> : vector<8xf32>
      %421 = vector.multi_reduction <add>, %420, %cst_134 [1] : vector<8x128xf32> to vector<8xf32>
      %422 = vector.shape_cast %421 : vector<8xf32> to vector<8x1xf32>
      %423 = vector.broadcast %422 : vector<8x1xf32> to vector<8x128xf32>
      %424 = arith.divf %420, %423 : vector<8x128xf32>
      %425 = arith.mulf %424, %409 : vector<8x128xf32>
      %cst_135 = arith.constant dense<0.000000e+00> : vector<8xf32>
      %426 = vector.multi_reduction <add>, %425, %cst_135 [1] : vector<8x128xf32> to vector<8xf32>
      %427 = vector.shape_cast %426 : vector<8xf32> to vector<8x1xf32>
      %428 = arith.addf %400, %427 : vector<8x1xf32>
      %c0_136 = arith.constant 0 : index
      %c0_137 = arith.constant 0 : index
      %429 = vector.load %arg4[%c0_136, %c0_137] : memref<8x1xf32, #tpu.memory_space<vmem>>, vector<8x1xf32>
      tpu.vector_store %arg4[%c0_136, %c0_137], %428 {strides = array<i32>} : memref<8x1xf32, #tpu.memory_space<vmem>>, vector<8x1xf32>,
    } else {
    }
    return
  }
  func.func @transform_0(%arg0: i32, %arg1: i32) -> (i32, i32) {
    %c0_i32 = arith.constant 0 : i32
    return %arg0, %arg1 : i32, i32
  }
  func.func @transform_1(%arg0: i32, %arg1: i32) -> (i32, i32) {
    %c0_i32 = arith.constant 0 : i32
    return %arg0, %arg1 : i32, i32
  }
  func.func @transform_2(%arg0: i32, %arg1: i32) -> (i32, i32) {
    %c0_i32 = arith.constant 0 : i32
    %c0_i32_0 = arith.constant 0 : i32
    return %arg0, %c0_i32 : i32, i32
  }
}

</mosaic_0001>

<bundles_post_ra>
// kernel: tpu_custom_call.1
= control target key start
LH: loop header
LB: loop body
LE: loop exit
PB: predicated region body
PF: predicated region fallthrough
CT: control target
= control target key end

     0   :  { %7 = vsyncpa [#allocation6], 0  ;;  %s1547_s0 = inlined_call_operand.hbm [shape: f32[8,300], index: 0, kind: input, shape index: {}]   ;;  %s1548_s1 = inlined_call_operand.hbm [shape: f32[8,300], index: 1, kind: input, shape index: {}]   ;;  %s1549_s2 = inlined_call_operand.vmem [shape: f32[8,1], index: 2, kind: output, shape index: {}]  }
   0x1   :  { %9 = vsyncpa [#allocation6 + $0x1], 0 }
   0x2   :  { %10 = vsyncpa [#allocation8], 0 }
   0x3   :  { %12 = vsyncpa [#allocation8 + $0x1], 0  ;;  %s1110_s9 = smov 0   ;;  %s1112_s10 = smov 0  }
   0x4   :  { %s1114_s11 = smov 0   ;;  %s1116_s12 = smov 0  }
   0x5   :  { %s1118_s13 = smov 0   ;;  %s1120_s14 = smov 0  }
   0x6 LB: > { %s873_s15 = sadd.s32 4294967295, %s1086_s14   ;;  %s27_s16 = sadd.s32 1, %s1082_s13  ;;  %s1086_s14 = sphi %s1120_s14, %s18_s14   ;;  %s1082_s13 = sphi %s1118_s13, %s1556_s13   ;;  %s1078_s12 = sphi %s1116_s12, %s1555_s12   ;;  %s1074_s11 = sphi %s1114_s11, %s1554_s11   ;;  %s1070_s10 = sphi %s1112_s10, %s1553_s10   ;;  %s1066_s9 = sphi %s1110_s9, %s1552_s9  }
   0x7   : > { %p28_p0 = scmp.ge.s32.totalorder %s27_s16, 3  ;;  %s39_s17 = sadd.s32 1, %s1074_s11 }
   0x8   : > { %p46_p1 = scmp.ne.s32.totalorder %s1074_s11, %s1070_s10  ;;  %p47_p2 = scmp.eq.s32.totalorder %s1086_s14, 0 }
   0x9   : > { %s1558_s16 = smov (%p28_p0, %s27_s16), 0  ;;  %p52_p4 = scmp.ne.s32.totalorder %s1070_s10, %s1066_s9 }
   0xa   : > { %p1146_p3 = por %p47_p2, %p46_p1  ;;  %s35_s19 = ssub.s32 %s1082_s13, %s1558_s16 }
   0xb   : > { %p53_p5 = scmp.eq.s32.totalorder %s873_s15, 0  ;;  %p37_p6 = scmp.eq.s32.totalorder %s35_s19, 0 }
   0xc   : > { %p900_p8 = scmp.lt.s32.totalorder %s1086_s14, 3  ;;  %s130_s22 = sand.u32 1, %s1074_s11  }
   0xd   : > { %p1153_p7 = por %p53_p5, %p52_p4  ;;  %s877_s23 = sshll.u32 %s1082_s13, 3 }
   0xe   : > { %s1159_s21 = scalar_select %p37_p6, %s1074_s11, %s39_s17  }
   0xf   : > { %s876_s24 = sshll.u32 %s130_s22, 3  ;;  %s140_s27 = scalar_lea.hbm %s1547_s0, %s877_s23 }
  0x10   : > { %s142_s28 = sshll.u32 %s140_s27, 4  ;;  %s134_s29 = scalar_lea.vmem [#allocation5], %s876_s24  ;;  %s143_s28 = int_to_ptr.hbm [resolvable:$true] %s142_s28 }
  0x11   : > { %s144_s30 = sshll.u32 %s134_s29, 4  ;;  %p894_p9 = pnand %p900_p8, %p1146_p3  ;;  %s145_s30 = int_to_ptr.vmem [resolvable:$true] %s144_s30 }
  0x12   : > { %p880_p10 = scmp.ge.s32.totalorder %s1086_s14, 1  ;;  %p170_p11 = scmp.lt.s32.totalorder %s1086_s14, 4 }
  0x13   : > { %s131_s3 = scalar_lea.sflag [#allocation6], %s130_s22  ;;  %s161_s6 = scalar_lea.hbm %s1548_s1, %s877_s23 }
  0x14   : > { %896 = dma.hbm_to_vmem [thread:$0]  (!%p894_p9), %s143_s28, 128, %s145_s30, %s131_s3  }
  0x15   : > { %p171_p12 = pnand %p880_p10, %p170_p11  ;;  %s163_s7 = sshll.u32 %s161_s6, 4  ;;  %s164_s7 = int_to_ptr.hbm [resolvable:$true] %s163_s7 }
  0x16   : > { %s155_s8 = scalar_lea.vmem [#allocation7], %s876_s24  ;;  %s152_s15 = scalar_lea.sflag [#allocation8], %s130_s22 }
  0x17   : > { %s165_s9 = sshll.u32 %s155_s8, 4  ;;  %174 = sbr.rel (%p171_p12) target bundleno = 4357 (0x1105), region = 28  ;;  %s166_s9 = int_to_ptr.vmem [resolvable:$true] %s165_s9 }
  0x18   : > { %899 = dma.hbm_to_vmem [thread:$0]  (!%p894_p9), %s164_s7, 128, %s166_s9, %s152_s15  }
  0x19   : > { %s176_s17 = sand.u32 (!%p171_p12), 1, %s1070_s10  }
  0x1a   : > { %s881_s18 = sshll.u32 (!%p171_p12), %s176_s17, 3  ;;  %s177_s19 = scalar_lea.sflag (!%p171_p12), [#allocation6], %s176_s17 }
  0x1b   : > { %s180_s25 = scalar_lea.vmem (!%p171_p12), [#allocation5], %s881_s18 }
  0x1c   : > { %1057 = dma.done.wait (%p1153_p7), %s177_s19, 128  }
  0x1d   : > { %1059 = vsyncadd (%p1153_p7), %s177_s19, 4294967168  ;;  %s187_s23 = scalar_lea.sflag [#allocation8], %s176_s17  ;;  %s190_s24 = scalar_lea.vmem [#allocation7], %s881_s18 }
  0x1e   : > { %1061 = dma.done.wait (%p1153_p7), %s187_s23, 128  }
  0x1f   : > { %1063 = vsyncadd (%p1153_p7), %s187_s23, 4294967168  ;;  %p883_p13 = scmp.ne.s32.totalorder %s1078_s12, 0 }
  0x21   : > { %223 = sbr.rel (%p883_p13) target bundleno = 42 (0x2a), region = 40 }
  0x26   : > { %v1088_v0 = vmov 1e+30   ;;  %v1089_v1 = vmov -1e+30   ;;  %v1090_v2 = vmov 0.0  }
  0x27   : > { %224 = vst [vmem:[#allocation2] sm:$0xff] %v1088_v0 }
  0x28   : > { %225 = vst [vmem:[#allocation3] sm:$0xff] %v1089_v1 }
  0x29   : > { %226 = vst [vmem:[#allocation4] sm:$0xff] %v1090_v2 }
  0x2a PF: > { %v1183_v3 = vld [vmem:[%s190_s24] sm:$0xff]  ;;  %s884_s22 = sshll.u32 %s1078_s12, 7  ;;  %v230_v4 = vlaneseq  ;;  %v1186_v5 = vld [vmem:[%s180_s25] sm:$0xff]  ;;  %p885_p0 = scmp.ne.s32.totalorder %s1078_s12, 2 }
  0x2b   : > { %v232_v6 = vstv %s884_s22  ;;  %vm235_vm0 = vcmp.eq.f32.partialorder %v1183_v3, 1.0 }
  0x2c   : > { %v1189_v7 = vand.u32 127, %v230_v4  ;;  %v239_v9 = vsel %vm235_vm0, -100.0, %v1186_v5 }
  0x2e   : > { %v1192_v8 = vadd.s32 %v232_v6, %v1189_v7  ;;  %v1201_v13 = vadd.s32 128, %v1189_v7 }
  0x2f   : > { %v308_v10 = vld [vmem:[#allocation3] sm:$0xff] }
  0x30   : > { %vm234_vm1 = vcmp.lt.s32.totalorder %v1192_v8, 300  ;;  %v1209_v29 = vld [vmem:[#allocation4] sm:$0xff] }
  0x31   : > { %v240_v11 = vsel %vm234_vm1, %v239_v9, -1e+30  ;;  %v1214_v30 = vsel %vm234_vm1, %v1186_v5, 0.0 }
  0x32   : > { %v310_v12 = vmax.f32 %v308_v10, %v240_v11 }
  0x34   : > { %311 = vmax.xlane.f32.xlu0 %v310_v12 }
  0xa7   : > { %v1203_v14 = vpop.xlane.xlu0 %311 }
  0xa8   : > { %vm313_vm2 = vcmp.eq.f32.partialorder %v308_v10, %v1203_v14  ;;  %vm314_vm3 = vcmp.eq.f32.partialorder %v240_v11, %v1203_v14 }
  0xa9   : > { %v315_v15 = vsel %vm313_vm2, %v1189_v7, 1073741824  ;;  %v316_v16 = vsel %vm314_vm3, %v1201_v13, 1073741824 }
  0xaa   : > { %vm317_vm4 = vcmp.lt.s32.totalorder %v315_v15, %v316_v16 }
  0xab   : > { %v318_v17 = vsel %vm317_vm4, %v315_v15, %v316_v16 }
  0xac   : > { %v320_v18 = vshra.s32 %v318_v17, 16  ;;  %v319_v20 = vand.u32 65535, %v318_v17 }
  0xae   : > { %v322_v19 = vcvt.s32.f32 %v320_v18  ;;  %v321_v22 = vcvt.s32.f32 %v319_v20 }
  0xb0   : > { %323 = vmin.xlane.f32.xlu0 %v322_v19 }
 0x123   : > { %v324_v21 = vpop.xlane.xlu0 %323 }
 0x124   : > { %vm325_vm5 = vcmp.eq.f32.partialorder %v322_v19, %v324_v21  ;;  %v330_v24 = vcvt.f32.s32 %v324_v21 }
 0x125   : > { %v326_v23 = vsel %vm325_vm5, %v321_v22, inf }
 0x126   : > { %327 = vmin.xlane.f32.xlu1 %v326_v23  ;;  %v331_v26 = vshll.u32 %v330_v24, 16 }
 0x199   : > { %v328_v25 = vpop.xlane.xlu1 %327 }
 0x19a   : > { %v329_v27 = vcvt.f32.s32 %v328_v25 }
 0x19c   : > { %v332_v28 = vadd.s32 %v331_v26, %v329_v27 }
 0x19e   : > { %vm333_vm6 = vcmp.eq.s32.totalorder %v1189_v7, %v332_v28  ;;  %vm334_vm7 = vcmp.eq.s32.totalorder %v1201_v13, %v332_v28 }
 0x19f   : > { %v342_v31 = vsel %vm333_vm6, -1e+30, %v308_v10  ;;  %v343_v32 = vsel %vm334_vm7, -1e+30, %v240_v11  ;;  %v1219_v33 = vsel %vm333_vm6, %v1209_v29, -1e+30 }
 0x1a0   : > { %v344_v34 = vmax.f32 %v342_v31, %v343_v32  ;;  %v1222_v35 = vsel %vm334_vm7, %v1214_v30, -1e+30 }
 0x1a1   : > { %v337_v36 = vmax.f32 %v1219_v33, %v1222_v35 }
 0x1a2   : > { %345 = vmax.xlane.f32.xlu1 %v344_v34 }
 0x215   : > { %v1226_v37 = vpop.xlane.xlu1 %345 }
 0x216   : > { %vm347_vm8 = vcmp.eq.f32.partialorder %v342_v31, %v1226_v37  ;;  %vm348_vm9 = vcmp.eq.f32.partialorder %v343_v32, %v1226_v37 }
 0x217   : > { %v349_v38 = vsel %vm347_vm8, %v1189_v7, 1073741824  ;;  %v350_v39 = vsel %vm348_vm9, %v1201_v13, 1073741824 }
 0x218   : > { %vm351_vm10 = vcmp.lt.s32.totalorder %v349_v38, %v350_v39 }
 0x219   : > { %v352_v40 = vsel %vm351_vm10, %v349_v38, %v350_v39 }
 0x21a   : > { %v354_v41 = vshra.s32 %v352_v40, 16  ;;  %v353_v43 = vand.u32 65535, %v352_v40 }
 0x21c   : > { %v356_v42 = vcvt.s32.f32 %v354_v41  ;;  %v355_v45 = vcvt.s32.f32 %v353_v43 }
 0x21e   : > { %357 = vmin.xlane.f32.xlu2 %v356_v42 }
 0x291   : > { %v358_v44 = vpop.xlane.xlu2 %357 }
 0x292   : > { %vm359_vm11 = vcmp.eq.f32.partialorder %v356_v42, %v358_v44  ;;  %v364_v47 = vcvt.f32.s32 %v358_v44 }
 0x293   : > { %v360_v46 = vsel %vm359_vm11, %v355_v45, inf }
 0x294   : > { %361 = vmin.xlane.f32.xlu2 %v360_v46  ;;  %v365_v49 = vshll.u32 %v364_v47, 16 }
 0x307   : > { %v362_v48 = vpop.xlane.xlu2 %361 }
 0x308   : > { %v363_v50 = vcvt.f32.s32 %v362_v48 }
 0x30a   : > { %v366_v51 = vadd.s32 %v365_v49, %v363_v50 }
 0x30c   : > { %vm367_vm12 = vcmp.eq.s32.totalorder %v1189_v7, %v366_v51  ;;  %vm368_vm13 = vcmp.eq.s32.totalorder %v1201_v13, %v366_v51 }
 0x30d   : > { %v376_v52 = vsel %vm367_vm12, -1e+30, %v342_v31  ;;  %v377_v53 = vsel %vm368_vm13, -1e+30, %v343_v32  ;;  %v1235_v54 = vsel %vm367_vm12, %v1209_v29, -1e+30 }
 0x30e   : > { %v378_v55 = vmax.f32 %v376_v52, %v377_v53  ;;  %v1238_v56 = vsel %vm368_vm13, %v1214_v30, -1e+30 }
 0x30f   : > { %v371_v57 = vmax.f32 %v1235_v54, %v1238_v56 }
 0x310   : > { %379 = vmax.xlane.f32.xlu0 %v378_v55 }
 0x383   : > { %v1242_v58 = vpop.xlane.xlu0 %379 }
 0x384   : > { %vm381_vm14 = vcmp.eq.f32.partialorder %v376_v52, %v1242_v58  ;;  %vm382_vm15 = vcmp.eq.f32.partialorder %v377_v53, %v1242_v58 }
 0x385   : > { %v383_v59 = vsel %vm381_vm14, %v1189_v7, 1073741824  ;;  %v384_v60 = vsel %vm382_vm15, %v1201_v13, 1073741824 }
 0x386   : > { %vm385_vm2 = vcmp.lt.s32.totalorder %v383_v59, %v384_v60 }
 0x387   : > { %v386_v61 = vsel %vm385_vm2, %v383_v59, %v384_v60 }
 0x388   : > { %v388_v62 = vshra.s32 %v386_v61, 16  ;;  %v387_v0 = vand.u32 65535, %v386_v61 }
 0x38a   : > { %v390_v63 = vcvt.s32.f32 %v388_v62  ;;  %v389_v2 = vcvt.s32.f32 %v387_v0 }
 0x38c   : > { %391 = vmin.xlane.f32.xlu1 %v390_v63 }
 0x3ff   : > { %v392_v1 = vpop.xlane.xlu1 %391 }
 0x400   : > { %vm393_vm3 = vcmp.eq.f32.partialorder %v390_v63, %v392_v1  ;;  %v398_v6 = vcvt.f32.s32 %v392_v1 }
 0x401   : > { %v394_v4 = vsel %vm393_vm3, %v389_v2, inf }
 0x402   : > { %395 = vmin.xlane.f32.xlu2 %v394_v4  ;;  %v399_v10 = vshll.u32 %v398_v6, 16 }
 0x475   : > { %v396_v9 = vpop.xlane.xlu2 %395 }
 0x476   : > { %v397_v11 = vcvt.f32.s32 %v396_v9 }
 0x478   : > { %v400_v12 = vadd.s32 %v399_v10, %v397_v11 }
 0x47a   : > { %vm401_vm4 = vcmp.eq.s32.totalorder %v1189_v7, %v400_v12  ;;  %vm402_vm5 = vcmp.eq.s32.totalorder %v1201_v13, %v400_v12 }
 0x47b   : > { %v410_v15 = vsel %vm401_vm4, -1e+30, %v376_v52  ;;  %v411_v16 = vsel %vm402_vm5, -1e+30, %v377_v53  ;;  %v1251_v17 = vsel %vm401_vm4, %v1209_v29, -1e+30 }
 0x47c   : > { %v412_v18 = vmax.f32 %v410_v15, %v411_v16  ;;  %v1254_v19 = vsel %vm402_vm5, %v1214_v30, -1e+30 }
 0x47d   : > { %v405_v20 = vmax.f32 %v1251_v17, %v1254_v19 }
 0x47e   : > { %413 = vmax.xlane.f32.xlu0 %v412_v18 }
 0x4f1   : > { %v1258_v21 = vpop.xlane.xlu0 %413 }
 0x4f2   : > { %vm415_vm6 = vcmp.eq.f32.partialorder %v410_v15, %v1258_v21  ;;  %vm416_vm7 = vcmp.eq.f32.partialorder %v411_v16, %v1258_v21 }
 0x4f3   : > { %v417_v22 = vsel %vm415_vm6, %v1189_v7, 1073741824  ;;  %v418_v23 = vsel %vm416_vm7, %v1201_v13, 1073741824 }
 0x4f4   : > { %vm419_vm8 = vcmp.lt.s32.totalorder %v417_v22, %v418_v23 }
 0x4f5   : > { %v420_v24 = vsel %vm419_vm8, %v417_v22, %v418_v23 }
 0x4f6   : > { %v422_v25 = vshra.s32 %v420_v24, 16  ;;  %v421_v27 = vand.u32 65535, %v420_v24 }
 0x4f8   : > { %v424_v26 = vcvt.s32.f32 %v422_v25  ;;  %v423_v31 = vcvt.s32.f32 %v421_v27 }
 0x4fa   : > { %425 = vmin.xlane.f32.xlu1 %v424_v26 }
 0x56d   : > { %v426_v28 = vpop.xlane.xlu1 %425 }
 0x56e   : > { %vm427_vm9 = vcmp.eq.f32.partialorder %v424_v26, %v426_v28  ;;  %v432_v34 = vcvt.f32.s32 %v426_v28 }
 0x56f   : > { %v428_v32 = vsel %vm427_vm9, %v423_v31, inf }
 0x570   : > { %429 = vmin.xlane.f32.xlu2 %v428_v32  ;;  %v433_v39 = vshll.u32 %v432_v34, 16 }
 0x5e3   : > { %v430_v38 = vpop.xlane.xlu2 %429 }
 0x5e4   : > { %v431_v40 = vcvt.f32.s32 %v430_v38 }
 0x5e6   : > { %v434_v41 = vadd.s32 %v433_v39, %v431_v40 }
 0x5e8   : > { %vm435_vm10 = vcmp.eq.s32.totalorder %v1189_v7, %v434_v41  ;;  %vm436_vm11 = vcmp.eq.s32.totalorder %v1201_v13, %v434_v41 }
 0x5e9   : > { %v445_v42 = vsel %vm435_vm10, -1e+30, %v410_v15  ;;  %v446_v43 = vsel %vm436_vm11, -1e+30, %v411_v16  ;;  %v1267_v44 = vsel %vm435_vm10, %v1209_v29, -1e+30 }
 0x5ea   : > { %v447_v45 = vmax.f32 %v445_v42, %v446_v43  ;;  %v1270_v46 = vsel %vm436_vm11, %v1214_v30, -1e+30 }
 0x5eb   : > { %v439_v47 = vmax.f32 %v1267_v44, %v1270_v46 }
 0x5ec   : > { %448 = vmax.xlane.f32.xlu0 %v447_v45 }
 0x65f   : > { %v1274_v48 = vpop.xlane.xlu0 %448 }
 0x660   : > { %vm450_vm12 = vcmp.eq.f32.partialorder %v445_v42, %v1274_v48  ;;  %vm451_vm13 = vcmp.eq.f32.partialorder %v446_v43, %v1274_v48 }
 0x661   : > { %v452_v49 = vsel %vm450_vm12, %v1189_v7, 1073741824  ;;  %v453_v50 = vsel %vm451_vm13, %v1201_v13, 1073741824 }
 0x662   : > { %vm454_vm14 = vcmp.lt.s32.totalorder %v452_v49, %v453_v50 }
 0x663   : > { %v455_v51 = vsel %vm454_vm14, %v452_v49, %v453_v50 }
 0x664   : > { %v457_v52 = vshra.s32 %v455_v51, 16  ;;  %v456_v55 = vand.u32 65535, %v455_v51 }
 0x666   : > { %v459_v53 = vcvt.s32.f32 %v457_v52  ;;  %v458_v60 = vcvt.s32.f32 %v456_v55 }
 0x668   : > { %460 = vmin.xlane.f32.xlu1 %v459_v53 }
 0x6db   : > { %v461_v59 = vpop.xlane.xlu1 %460 }
 0x6dc   : > { %vm462_vm15 = vcmp.eq.f32.partialorder %v459_v53, %v461_v59  ;;  %v467_v62 = vcvt.f32.s32 %v461_v59 }
 0x6dd   : > { %v463_v61 = vsel %vm462_vm15, %v458_v60, inf }
 0x6de   : > { %464 = vmin.xlane.f32.xlu2 %v463_v61  ;;  %v468_v0 = vshll.u32 %v467_v62, 16 }
 0x751   : > { %v465_v63 = vpop.xlane.xlu2 %464 }
 0x752   : > { %v466_v1 = vcvt.f32.s32 %v465_v63 }
 0x754   : > { %v469_v2 = vadd.s32 %v468_v0, %v466_v1 }
 0x756   : > { %vm470_vm2 = vcmp.eq.s32.totalorder %v1189_v7, %v469_v2  ;;  %vm471_vm3 = vcmp.eq.s32.totalorder %v1201_v13, %v469_v2 }
 0x757   : > { %v480_v4 = vsel %vm470_vm2, -1e+30, %v445_v42  ;;  %v481_v6 = vsel %vm471_vm3, -1e+30, %v446_v43  ;;  %v1283_v9 = vsel %vm470_vm2, %v1209_v29, -1e+30  ;;  %vm236_vm2 = vmand %vm235_vm0, %vm234_vm1 }
 0x758   : > { %v482_v10 = vmax.f32 %v480_v4, %v481_v6  ;;  %v1286_v11 = vsel %vm471_vm3, %v1214_v30, -1e+30 }
 0x759   : > { %v474_v12 = vmax.f32 %v1283_v9, %v1286_v11 }
 0x75a   : > { %483 = vmax.xlane.f32.xlu0 %v482_v10 }
 0x7cd   : > { %v1290_v15 = vpop.xlane.xlu0 %483 }
 0x7ce   : > { %vm485_vm4 = vcmp.eq.f32.partialorder %v480_v4, %v1290_v15  ;;  %vm486_vm5 = vcmp.eq.f32.partialorder %v481_v6, %v1290_v15 }
 0x7cf   : > { %v487_v16 = vsel %vm485_vm4, %v1189_v7, 1073741824  ;;  %v488_v18 = vsel %vm486_vm5, %v1201_v13, 1073741824 }
 0x7d0   : > { %vm489_vm6 = vcmp.lt.s32.totalorder %v487_v16, %v488_v18 }
 0x7d1   : > { %v490_v22 = vsel %vm489_vm6, %v487_v16, %v488_v18 }
 0x7d2   : > { %v492_v23 = vshra.s32 %v490_v22, 16  ;;  %v491_v25 = vand.u32 65535, %v490_v22 }
 0x7d4   : > { %v494_v24 = vcvt.s32.f32 %v492_v23  ;;  %v493_v27 = vcvt.s32.f32 %v491_v25  ;;  %v1326_v25 = vld [vmem:[#allocation2] sm:$0xff] }
 0x7d6   : > { %495 = vmin.xlane.f32.xlu1 %v494_v24 }
 0x849   : > { %v496_v26 = vpop.xlane.xlu1 %495 }
 0x84a   : > { %vm497_vm7 = vcmp.eq.f32.partialorder %v494_v24, %v496_v26  ;;  %v502_v31 = vcvt.f32.s32 %v496_v26  ;;  %v1091_v26 = vmov 1e+30  }
 0x84b   : > { %v498_v28 = vsel %vm497_vm7, %v493_v27, inf  ;;  %v237_v27 = vsel %vm234_vm1, 100.0, %v1091_v26 }
 0x84c   : > { %499 = vmin.xlane.f32.xlu2 %v498_v28  ;;  %v503_v34 = vshll.u32 %v502_v31, 16  ;;  %v1331_v28 = vsel %vm236_vm2, %v1186_v5, %v237_v27 }
 0x84d   : > { %v244_v31 = vmin.f32 %v1326_v25, %v1331_v28 }
 0x8bf   : > { %v500_v32 = vpop.xlane.xlu2 %499 }
 0x8c0   : > { %v501_v38 = vcvt.f32.s32 %v500_v32 }
 0x8c2   : > { %v504_v39 = vadd.s32 %v503_v34, %v501_v38 }
 0x8c4   : > { %vm505_vm8 = vcmp.eq.s32.totalorder %v1189_v7, %v504_v39  ;;  %vm506_vm9 = vcmp.eq.s32.totalorder %v1201_v13, %v504_v39 }
 0x8c5   : > { %v515_v40 = vsel %vm505_vm8, -1e+30, %v480_v4  ;;  %v516_v41 = vsel %vm506_vm9, -1e+30, %v481_v6  ;;  %v1299_v42 = vsel %vm505_vm8, %v1209_v29, -1e+30 }
 0x8c6   : > { %v517_v43 = vmax.f32 %v515_v40, %v516_v41  ;;  %v1302_v45 = vsel %vm506_vm9, %v1214_v30, -1e+30 }
 0x8c7   : > { %v509_v49 = vmax.f32 %v1299_v42, %v1302_v45 }
 0x8c8   : > { %518 = vmax.xlane.f32.xlu0 %v517_v43 }
 0x93b   : > { %v1306_v50 = vpop.xlane.xlu0 %518 }
 0x93c   : > { %vm520_vm10 = vcmp.eq.f32.partialorder %v515_v40, %v1306_v50  ;;  %vm521_vm11 = vcmp.eq.f32.partialorder %v516_v41, %v1306_v50 }
 0x93d   : > { %v522_v51 = vsel %vm520_vm10, %v1189_v7, 1073741824  ;;  %v523_v52 = vsel %vm521_vm11, %v1201_v13, 1073741824 }
 0x93e   : > { %vm524_vm12 = vcmp.lt.s32.totalorder %v522_v51, %v523_v52 }
 0x93f   : > { %v525_v53 = vsel %vm524_vm12, %v522_v51, %v523_v52 }
 0x940   : > { %v527_v55 = vshra.s32 %v525_v53, 16  ;;  %v526_v60 = vand.u32 65535, %v525_v53 }
 0x942   : > { %v529_v59 = vcvt.s32.f32 %v527_v55  ;;  %v528_v62 = vcvt.s32.f32 %v526_v60 }
 0x944   : > { %530 = vmin.xlane.f32.xlu1 %v529_v59 }
 0x9b7   : > { %v531_v61 = vpop.xlane.xlu1 %530 }
 0x9b8   : > { %vm532_vm13 = vcmp.eq.f32.partialorder %v529_v59, %v531_v61  ;;  %v537_v0 = vcvt.f32.s32 %v531_v61 }
 0x9b9   : > { %v533_v63 = vsel %vm532_vm13, %v528_v62, inf }
 0x9ba   : > { %534 = vmin.xlane.f32.xlu2 %v533_v63  ;;  %v538_v2 = vshll.u32 %v537_v0, 16 }
 0xa2d   : > { %v535_v1 = vpop.xlane.xlu2 %534 }
 0xa2e   : > { %v536_v4 = vcvt.f32.s32 %v535_v1 }
 0xa30   : > { %v539_v6 = vadd.s32 %v538_v2, %v536_v4 }
 0xa32   : > { %vm540_vm14 = vcmp.eq.s32.totalorder %v1189_v7, %v539_v6  ;;  %vm541_vm15 = vcmp.eq.s32.totalorder %v1201_v13, %v539_v6 }
 0xa33   : > { %v550_v10 = vsel %vm540_vm14, -1e+30, %v515_v40  ;;  %v551_v16 = vsel %vm541_vm15, -1e+30, %v516_v41  ;;  %v1315_v18 = vsel %vm540_vm14, %v1209_v29, -1e+30 }
 0xa34   : > { %v552_v22 = vmax.f32 %v550_v10, %v551_v16  ;;  %v1318_v23 = vsel %vm541_vm15, %v1214_v30, -1e+30 }
 0xa35   : > { %v544_v24 = vmax.f32 %v1315_v18, %v1318_v23 }
 0xa36   : > { %553 = vmax.xlane.f32.xlu0 %v552_v22 }
 0xa3e   : > { %245 = vmin.xlane.f32.xlu0 %v244_v31 }
 0xaa9   : > { %v1335_v32 = vpop.xlane.xlu0 %553 }
 0xaaa   : > { %vm555_vm3 = vcmp.eq.f32.partialorder %v550_v10, %v1335_v32  ;;  %vm556_vm4 = vcmp.eq.f32.partialorder %v551_v16, %v1335_v32 }
 0xaab   : > { %v557_v3 = vsel %vm555_vm3, %v1189_v7, 1073741824  ;;  %v558_v34 = vsel %vm556_vm4, %v1201_v13, 1073741824 }
 0xaac   : > { %vm559_vm0 = vcmp.lt.s32.totalorder %v557_v3, %v558_v34 }
 0xaad   : > { %v560_v8 = vsel %vm559_vm0, %v557_v3, %v558_v34 }
 0xaae   : > { %v562_v38 = vshra.s32 %v560_v8, 16  ;;  %v561_v43 = vand.u32 65535, %v560_v8 }
 0xab0   : > { %v564_v39 = vcvt.s32.f32 %v562_v38  ;;  %v563_v52 = vcvt.s32.f32 %v561_v43 }
 0xab1   : > { %v1341_v5 = vpop.xlane.xlu0 %245 }
 0xab2   : > { %565 = vmin.xlane.f32.xlu1 %v564_v39  ;;  %vm247_vm1 = vcmp.eq.f32.partialorder %v1326_v25, %v1341_v5  ;;  %vm248_vm5 = vcmp.eq.f32.partialorder %v1331_v28, %v1341_v5 }
 0xab3   : > { %v249_v40 = vsel %vm247_vm1, %v1189_v7, 1073741824  ;;  %v250_v41 = vsel %vm248_vm5, %v1201_v13, 1073741824 }
 0xab4   : > { %vm251_vm6 = vcmp.lt.s32.totalorder %v249_v40, %v250_v41 }
 0xab5   : > { %v252_v53 = vsel %vm251_vm6, %v249_v40, %v250_v41 }
 0xab6   : > { %v254_v59 = vshra.s32 %v252_v53, 16  ;;  %v253_v2 = vand.u32 65535, %v252_v53 }
 0xab8   : > { %v256_v60 = vcvt.s32.f32 %v254_v59  ;;  %v255_v34 = vcvt.s32.f32 %v253_v2 }
 0xb25   : > { %v566_v51 = vpop.xlane.xlu1 %565 }
 0xb26   : > { %vm567_vm7 = vcmp.eq.f32.partialorder %v564_v39, %v566_v51  ;;  %v572_v61 = vcvt.f32.s32 %v566_v51 }
 0xb27   : > { %v568_v55 = vsel %vm567_vm7, %v563_v52, inf  ;;  %vm269_vm7 = vcmp.eq.s32.totalorder %v1189_v7, 0 }
 0xb28   : > { %569 = vmin.xlane.f32.xlu2 %v568_v55  ;;  %v573_v63 = vshll.u32 %v572_v61, 16 }
 0xb30   : > { %257 = vmin.xlane.f32.xlu2 %v256_v60 }
 0xb9b   : > { %v570_v62 = vpop.xlane.xlu2 %569 }
 0xb9c   : > { %v571_v0 = vcvt.f32.s32 %v570_v62 }
 0xb9e   : > { %v574_v1 = vadd.s32 %v573_v63, %v571_v0 }
 0xba0   : > { %vm575_vm8 = vcmp.eq.s32.totalorder %v1189_v7, %v574_v1  ;;  %vm576_vm9 = vcmp.eq.s32.totalorder %v1201_v13, %v574_v1 }
 0xba1   : > { %v585_v4 = vsel %vm575_vm8, -1e+30, %v550_v10  ;;  %v586_v6 = vsel %vm576_vm9, -1e+30, %v551_v16  ;;  %v1352_v22 = vsel %vm575_vm8, %v1209_v29, -1e+30 }
 0xba2   : > { %v587_v26 = vmax.f32 %v585_v4, %v586_v6  ;;  %v1355_v27 = vsel %vm576_vm9, %v1214_v30, -1e+30  ;;  %vm298_vm8 = vcmp.eq.s32.totalorder %v1189_v7, 1  ;;  %vm305_vm9 = vcmp.eq.s32.totalorder %v1189_v7, 2 }
 0xba3   : > { %v258_v31 = vpop.xlane.xlu2 %257  ;;  %v579_v3 = vmax.f32 %v1352_v22, %v1355_v27 }
 0xba4   : > { %588 = vmax.xlane.f32.xlu1 %v587_v26  ;;  %vm259_vm10 = vcmp.eq.f32.partialorder %v256_v60, %v258_v31  ;;  %v264_v39 = vcvt.f32.s32 %v258_v31 }
 0xba5   : > { %v260_v8 = vsel %vm259_vm10, %v255_v34, inf  ;;  %vm442_vm10 = vcmp.eq.s32.totalorder %v1189_v7, 3 }
 0xba6   : > { %v265_v43 = vshll.u32 %v264_v39, 16 }
 0xbac   : > { %261 = vmin.xlane.f32.xlu1 %v260_v8 }
 0xc17   : > { %v1359_v38 = vpop.xlane.xlu1 %588 }
 0xc18   : > { %vm590_vm11 = vcmp.eq.f32.partialorder %v585_v4, %v1359_v38  ;;  %vm591_vm12 = vcmp.eq.f32.partialorder %v586_v6, %v1359_v38 }
 0xc19   : > { %v592_v10 = vsel %vm590_vm11, %v1189_v7, 1073741824  ;;  %v593_v16 = vsel %vm591_vm12, %v1201_v13, 1073741824  ;;  %vm477_vm11 = vcmp.eq.s32.totalorder %v1189_v7, 4  ;;  %vm512_vm12 = vcmp.eq.s32.totalorder %v1189_v7, 5 }
 0xc1a   : > { %vm594_vm13 = vcmp.lt.s32.totalorder %v592_v10, %v593_v16 }
 0xc1b   : > { %v595_v40 = vsel %vm594_vm13, %v592_v10, %v593_v16  ;;  %vm547_vm13 = vcmp.eq.s32.totalorder %v1189_v7, 6 }
 0xc1c   : > { %v597_v41 = vshra.s32 %v595_v40, 16  ;;  %v596_v62 = vand.u32 65535, %v595_v40 }
 0xc1e   : > { %v599_v51 = vcvt.s32.f32 %v597_v41  ;;  %v598_v0 = vcvt.s32.f32 %v596_v62 }
 0xc1f   : > { %v262_v52 = vpop.xlane.xlu1 %261 }
 0xc20   : > { %v263_v53 = vcvt.f32.s32 %v262_v52  ;;  %600 = vmin.xlane.f32.xlu0 %v599_v51 }
 0xc22   : > { %v266_v55 = vadd.s32 %v265_v43, %v263_v53 }
 0xc24   : > { %vm267_vm14 = vcmp.eq.s32.totalorder %v1189_v7, %v266_v55  ;;  %vm268_vm15 = vcmp.eq.s32.totalorder %v1201_v13, %v266_v55 }
 0xc25   : > { %v1368_v59 = vsel %vm267_vm14, 1e+30, %v1326_v25  ;;  %v1371_v60 = vsel %vm268_vm15, 1e+30, %v1331_v28  ;;  %vm582_vm14 = vcmp.eq.s32.totalorder %v1189_v7, 7  ;;  %vm617_vm15 = vcmp.eq.s32.totalorder %v1189_v7, 8 }
 0xc26   : > { %v273_v61 = vmin.f32 %v1368_v59, %v1371_v60 }
 0xc28   : > { %274 = vmin.xlane.f32.xlu0 %v273_v61 }
 0xc93   : > { %v601_v63 = vpop.xlane.xlu0 %600 }
 0xc94   : > { %vm602_vm2 = vcmp.eq.f32.partialorder %v599_v51, %v601_v63  ;;  %v607_v8 = vcvt.f32.s32 %v601_v63 }
 0xc95   : > { %v603_v1 = vsel %vm602_vm2, %v598_v0, inf  ;;  %vm652_vm2 = vcmp.eq.s32.totalorder %v1189_v7, 9 }
 0xc96   : > { %604 = vmin.xlane.f32.xlu2 %v603_v1  ;;  %v608_v16 = vshll.u32 %v607_v8, 16 }
 0xc9b   : > { %v1375_v2 = vpop.xlane.xlu0 %274 }
 0xc9c   : > { %vm276_vm3 = vcmp.eq.f32.partialorder %v1368_v59, %v1375_v2  ;;  %vm277_vm4 = vcmp.eq.f32.partialorder %v1371_v60, %v1375_v2 }
 0xc9d   : > { %v278_v25 = vsel %vm276_vm3, %v1189_v7, 1073741824  ;;  %v279_v28 = vsel %vm277_vm4, %v1201_v13, 1073741824 }
 0xc9e   : > { %vm280_vm0 = vcmp.lt.s32.totalorder %v278_v25, %v279_v28 }
 0xc9f   : > { %v281_v26 = vsel %vm280_vm0, %v278_v25, %v279_v28 }
 0xca0   : > { %v283_v31 = vshra.s32 %v281_v26, 16  ;;  %v282_v61 = vand.u32 65535, %v281_v26 }
 0xca2   : > { %v285_v34 = vcvt.s32.f32 %v283_v31  ;;  %v284_v63 = vcvt.s32.f32 %v282_v61 }
 0xca4   : > { %286 = vmin.xlane.f32.xlu2 %v285_v34 }
 0xd09   : > { %v605_v10 = vpop.xlane.xlu2 %604 }
 0xd0a   : > { %v606_v39 = vcvt.f32.s32 %v605_v10 }
 0xd0c   : > { %v609_v40 = vadd.s32 %v608_v16, %v606_v39 }
 0xd0e   : > { %vm610_vm1 = vcmp.eq.s32.totalorder %v1189_v7, %v609_v40  ;;  %vm611_vm5 = vcmp.eq.s32.totalorder %v1201_v13, %v609_v40 }
 0xd0f   : > { %v620_v41 = vsel %vm610_vm1, -1e+30, %v585_v4  ;;  %v621_v43 = vsel %vm611_vm5, -1e+30, %v586_v6  ;;  %v1386_v51 = vsel %vm610_vm1, %v1209_v29, -1e+30 }
 0xd10   : > { %v622_v52 = vmax.f32 %v620_v41, %v621_v43  ;;  %v1389_v53 = vsel %vm611_vm5, %v1214_v30, -1e+30  ;;  %v340_v4 = vsel %vm269_vm7, %v1203_v14, -1e+30 }
 0xd11   : > { %v614_v55 = vmax.f32 %v1386_v51, %v1389_v53  ;;  %v374_v54 = vsel %vm298_vm8, %v1226_v37, %v340_v4 }
 0xd12   : > { %623 = vmax.xlane.f32.xlu1 %v622_v52  ;;  %v408_v56 = vsel %vm305_vm9, %v1242_v58, %v374_v54 }
 0xd17   : > { %v287_v62 = vpop.xlane.xlu2 %286 }
 0xd18   : > { %vm288_vm6 = vcmp.eq.f32.partialorder %v285_v34, %v287_v62  ;;  %v293_v27 = vcvt.f32.s32 %v287_v62 }
 0xd19   : > { %v289_v0 = vsel %vm288_vm6, %v284_v63, inf }
 0xd1a   : > { %290 = vmin.xlane.f32.xlu1 %v289_v0 }
 0xd22   : > { %372 = vmax.xlane.f32.xlu1 %v371_v57  ;;  %v443_v57 = vsel %vm442_vm10, %v1258_v21, %v408_v56 }
 0xd23   : > { %v478_v14 = vsel %vm477_vm11, %v1274_v48, %v443_v57 }
 0xd24   : > { %v513_v37 = vsel %vm512_vm12, %v1290_v15, %v478_v14 }
 0xd25   : > { %v548_v58 = vsel %vm547_vm13, %v1306_v50, %v513_v37 }
 0xd26   : > { %v583_v21 = vsel %vm582_vm14, %v1335_v32, %v548_v58 }
 0xd27   : > { %v618_v48 = vsel %vm617_vm15, %v1359_v38, %v583_v21  ;;  %v294_v38 = vshll.u32 %v293_v27, 16 }
 0xd2a   : > { %475 = vmax.xlane.f32.xlu1 %v474_v12 }
 0xd32   : > { %580 = vmax.xlane.f32.xlu1 %v579_v3 }
 0xd85   : > { %v624_v9 = vpop.xlane.xlu1 %623 }
 0xd86   : > { %vm625_vm3 = vcmp.eq.f32.partialorder %v620_v41, %v624_v9  ;;  %vm626_vm4 = vcmp.eq.f32.partialorder %v621_v43, %v624_v9  ;;  %v653_v11 = vsel %vm652_vm2, %v624_v9, %v618_v48 }
 0xd87   : > { %v627_v12 = vsel %vm625_vm3, %v1189_v7, 1073741824  ;;  %v628_v15 = vsel %vm626_vm4, %v1201_v13, 1073741824  ;;  %655 = vst [vmem:[#allocation3] sm:$0xff] %v653_v11 }
 0xd88   : > { %vm629_vm0 = vcmp.lt.s32.totalorder %v627_v12, %v628_v15 }
 0xd89   : > { %v630_v50 = vsel %vm629_vm0, %v627_v12, %v628_v15 }
 0xd8a   : > { %v632_v6 = vshra.s32 %v630_v50, 16  ;;  %v631_v25 = vand.u32 65535, %v630_v50 }
 0xd8c   : > { %v634_v22 = vcvt.s32.f32 %v632_v6  ;;  %v633_v44 = vcvt.s32.f32 %v631_v25 }
 0xd8d   : > { %v291_v32 = vpop.xlane.xlu1 %290 }
 0xd8e   : > { %635 = vmin.xlane.f32.xlu0 %v634_v22  ;;  %v292_v3 = vcvt.f32.s32 %v291_v32 }
 0xd90   : > { %v295_v1 = vadd.s32 %v294_v38, %v292_v3 }
 0xd92   : > { %vm296_vm1 = vcmp.eq.s32.totalorder %v1189_v7, %v295_v1  ;;  %vm297_vm5 = vcmp.eq.s32.totalorder %v1201_v13, %v295_v1 }
 0xd93   : > { %v300_v33 = vsel %vm296_vm1, 1e+30, %v1368_v59  ;;  %v301_v35 = vsel %vm297_vm5, 1e+30, %v1371_v60 }
 0xd96   : > { %338 = vmax.xlane.f32.xlu0 %v337_v36  ;;  %v302_v36 = vmin.f32 %v300_v33, %v301_v35 }
 0xd9e   : > { %440 = vmax.xlane.f32.xlu0 %v439_v47 }
 0xda6   : > { %545 = vmax.xlane.f32.xlu0 %v544_v24  ;;  %v270_v24 = vsel %vm269_vm7, %v1341_v5, 1e+30 }
 0xda7   : > { %v299_v59 = vsel %vm298_vm8, %v1375_v2, %v270_v24  ;;  %v373_v2 = vpop.xlane.xlu1 %372 }
 0xdae   : > { %303 = vmin.xlane.f32.xlu0 %v302_v36 }
 0xdaf   : > { %v476_v8 = vpop.xlane.xlu1 %475 }
 0xe01   : > { %v636_v28 = vpop.xlane.xlu0 %635 }
 0xe02   : > { %vm637_vm6 = vcmp.eq.f32.partialorder %v634_v22, %v636_v28 }
 0xe03   : > { %v638_v46 = vsel %vm637_vm6, %v633_v44, inf }
 0xe04   : > { %639 = vmin.xlane.f32.xlu2 %v638_v46 }
 0xe09   : > { %v339_v47 = vpop.xlane.xlu0 %338 }
 0xe0a   : > { %v341_v10 = vsel %vm269_vm7, %v339_v47, 0.0 }
 0xe0b   : > { %v375_v16 = vsel %vm298_vm8, %v373_v2, %v341_v10 }
 0xe0c   : > { %406 = vmax.xlane.f32.xlu2 %v405_v20  ;;  %v642_v20 = vcvt.f32.s32 %v636_v28 }
 0xe0e   : > { %v643_v45 = vshll.u32 %v642_v20, 16 }
 0xe11   : > { %v441_v18 = vpop.xlane.xlu0 %440 }
 0xe14   : > { %510 = vmax.xlane.f32.xlu2 %v509_v49 }
 0xe19   : > { %v546_v23 = vpop.xlane.xlu0 %545 }
 0xe1c   : > { %615 = vmax.xlane.f32.xlu2 %v614_v55 }
 0xe21   : > { %v304_v17 = vpop.xlane.xlu0 %303 }
 0xe22   : > { %v306_v19 = vsel %vm305_vm9, %v304_v17, %v299_v59 }
 0xe23   : > { %307 = vst [vmem:[#allocation2] sm:$0xff] %v306_v19 }
 0xe77   : > { %v640_v42 = vpop.xlane.xlu2 %639 }
 0xe78   : > { %v641_v49 = vcvt.f32.s32 %v640_v42 }
 0xe7a   : > { %v644_v60 = vadd.s32 %v643_v45, %v641_v49 }
 0xe7c   : > { %vm645_vm3 = vcmp.eq.s32.totalorder %v1189_v7, %v644_v60  ;;  %vm646_vm4 = vcmp.eq.s32.totalorder %v1201_v13, %v644_v60 }
 0xe7d   : > { %v647_v5 = vsel %vm645_vm3, %v1209_v29, -1e+30  ;;  %v648_v26 = vsel %vm646_vm4, %v1214_v30, -1e+30  ;;  %v581_v29 = vpop.xlane.xlu1 %580 }
 0xe7e   : > { %v649_v31 = vmax.f32 %v647_v5, %v648_v26 }
 0xe7f   : > { %v407_v34 = vpop.xlane.xlu2 %406 }
 0xe80   : > { %650 = vmax.xlane.f32.xlu1 %v649_v31  ;;  %v409_v39 = vsel %vm305_vm9, %v407_v34, %v375_v16 }
 0xe81   : > { %v444_v13 = vsel %vm442_vm10, %v441_v18, %v409_v39 }
 0xe82   : > { %v479_v30 = vsel %vm477_vm11, %v476_v8, %v444_v13 }
 0xe87   : > { %v511_v40 = vpop.xlane.xlu2 %510 }
 0xe88   : > { %v514_v41 = vsel %vm512_vm12, %v511_v40, %v479_v30 }
 0xe89   : > { %v549_v43 = vsel %vm547_vm13, %v546_v23, %v514_v41 }
 0xe8a   : > { %v584_v52 = vsel %vm582_vm14, %v581_v29, %v549_v43 }
 0xe8f   : > { %v616_v51 = vpop.xlane.xlu2 %615 }
 0xe90   : > { %v619_v53 = vsel %vm617_vm15, %v616_v51, %v584_v52 }
 0xef1   : > { %660 = sbr.rel (%p885_p0) target bundleno = 4357 (0x1105), region = 44 }
 0xef3   : > { %v651_v55 = vpop.xlane.xlu1 %650 }
 0xef4   : > { %v654_v61 = vsel %vm652_vm2, %v651_v55, %v619_v53 }
 0xef5   : > { %656 = vst [vmem:[#allocation4] sm:$0xff] %v654_v61 }
 0xef6   : > { %v1092_v62 = vmov 0   ;;  %v1093_v63 = vmov 2   ;;  %v1094_v0 = vmov 1   ;;  %vm661_vm7 = vcmp.lt.s32.totalorder %v1189_v7, 10 }
 0xef7   : > { %956 = vset.pattern.permute.xlu0 %v1092_v62  ;;  %958 = vset.pattern.permute.xlu1 %v1093_v63 }
 0xef8   : > { %664 = vperm.xlu0 %956, %v306_v19   ;;  %738 = vperm.xlu1 %958, %v306_v19  }
 0xf00   : > { %957 = vset.pattern.permute.xlu0 %v1094_v0 }
 0xf01   : > { %701 = vperm.xlu0 %957, %v306_v19  }
 0xf09   : > { %959 = vset.pattern.permute.xlu0 %v1093_v63 }
 0xf6a   : > { %v665_v4 = vpop.permute.xlu0 %664  ;;  %v739_v56 = vpop.permute.xlu1 %738 }
 0xf6b   : > { %v667_v54 = vsub.f32 %v654_v61, %v665_v4  ;;  %v741_v14 = vsub.f32 %v654_v61, %v739_v56 }
 0xf6d   : > { %v668_v57 = vadd.f32 1.0, %v667_v54  ;;  %v742_v21 = vadd.f32 1.0, %v741_v14 }
 0xf6f   : > { %v669_v37 = vmax.f32 %v668_v57, 0.0  ;;  %v743_v50 = vmax.f32 %v742_v21, 0.0 }
 0xf71   : > { %v1501_v58 = vsel %vm661_vm7, %v669_v37, 0.0  ;;  %v1513_v32 = vsel %vm661_vm7, %v743_v50, 0.0 }
 0xf72   : > { %vm671_vm8 = vcmp.eq.f32.partialorder %v1501_v58, 0.0  ;;  %vm745_vm10 = vcmp.eq.f32.partialorder %v1513_v32, 0.0 }
 0xf73   : > { %v702_v9 = vpop.permute.xlu0 %701  ;;  %v672_v48 = vsel %vm671_vm8, -100.0, %v1501_v58  ;;  %v746_v38 = vsel %vm745_vm10, -100.0, %v1513_v32 }
 0xf74   : > { %v704_v11 = vsub.f32 %v654_v61, %v702_v9  ;;  %v673_v12 = vsel %vm661_vm7, %v672_v48, -1e+30  ;;  %v747_v1 = vsel %vm661_vm7, %v746_v38, -1e+30 }
 0xf75   : > { %674 = vmax.xlane.f32.xlu1 %v673_v12 }
 0xf76   : > { %v705_v15 = vadd.f32 1.0, %v704_v11 }
 0xf78   : > { %v706_v6 = vmax.f32 %v705_v15, 0.0 }
 0xf7a   : > { %v1509_v22 = vsel %vm661_vm7, %v706_v6, 0.0 }
 0xf7b   : > { %vm708_vm9 = vcmp.eq.f32.partialorder %v1509_v22, 0.0 }
 0xf7c   : > { %v709_v27 = vsel %vm708_vm9, -100.0, %v1509_v22 }
 0xf7d   : > { %v710_v3 = vsel %vm661_vm7, %v709_v27, -1e+30  ;;  %vm774_vm7 = vcmask 7168  }
 0xf7e   : > { %711 = vmax.xlane.f32.xlu2 %v710_v3 }
 0xf86   : > { %748 = vmax.xlane.f32.xlu2 %v747_v1 }
 0xfe8   : > { %v675_v33 = vpop.xlane.xlu1 %674 }
 0xfe9   : > { %v676_v35 = vsub.f32 %v673_v12, %v675_v33 }
 0xfeb   : > { %v677_v36 = vmul.f32 1.442695, %v676_v35 }
 0xfed   : > { %960 = vpow2.f32 %v677_v36 }
 0xff1   : > { %v712_v25 = vpop.xlane.xlu2 %711 }
 0xff2   : > { %v713_v28 = vsub.f32 %v710_v3, %v712_v25 }
 0xff3   : > { %v961_v44 = vpop.eup %960 }
 0xff4   : > { %v714_v46 = vmul.f32 1.442695, %v713_v28  ;;  %679 = vadd.xlane.f32.xlu2 %v961_v44 }
 0xff6   : > { %962 = vpow2.f32 %v714_v46 }
 0xff9   : > { %v749_v47 = vpop.xlane.xlu2 %748 }
 0xffa   : > { %v750_v18 = vsub.f32 %v747_v1, %v749_v47 }
 0xffc   : > { %v963_v23 = vpop.eup %962  ;;  %v751_v24 = vmul.f32 1.442695, %v750_v18 }
 0xffd   : > { %716 = vadd.xlane.f32.xlu0 %v963_v23 }
 0xffe   : > { %964 = vpow2.f32 %v751_v24 }
0x1004   : > { %v965_v59 = vpop.eup %964 }
0x1005   : > { %753 = vadd.xlane.f32.xlu2 %v965_v59 }
0x1067   : > { %v680_v7 = vpop.xlane.xlu2 %679 }
0x1068   : > { %966 = vrcp.f32 %v680_v7  ;;  %v692_v45 = vand.u32 2147483648, %v680_v7  ;;  %v690_v60 = vand.u32 2147483647, %v680_v7  ;;  %vm686_vm12 = vweird.f32 %v680_v7 }
0x106a   : > { %v693_v26 = vor.u32 1.1754944e-38, %v692_v45  ;;  %vm691_vm14 = vcmp.eq.f32.partialorder %v690_v60, 8.507059e+37 }
0x106e   : > { %v967_v17 = vpop.eup %966 }
0x106f   : > { %v682_v19 = vmul.f32 %v967_v17, %v680_v7  ;;  %vm687_vm11 = vweird.f32 %v967_v17 }
0x1070   : > { %v717_v20 = vpop.xlane.xlu0 %716  ;;  %vm688_vm13 = vmor %vm686_vm12, %vm687_vm11 }
0x1071   : > { %v683_v42 = vsub.f32 1.0, %v682_v19  ;;  %968 = vrcp.f32 %v717_v20  ;;  %v729_v40 = vand.u32 2147483648, %v717_v20  ;;  %v727_v30 = vand.u32 2147483647, %v717_v20 }
0x1072   : > { %vm723_vm2 = vweird.f32 %v717_v20 }
0x1073   : > { %v684_v49 = vmul.f32 %v967_v17, %v683_v42  ;;  %v730_v51 = vor.u32 1.1754944e-38, %v729_v40  ;;  %vm728_vm1 = vcmp.eq.f32.partialorder %v727_v30, 8.507059e+37 }
0x1075   : > { %v685_v5 = vadd.f32 %v967_v17, %v684_v49 }
0x1077   : > { %v969_v31 = vpop.eup %968  ;;  %v689_v2 = vsel %vm688_vm13, %v967_v17, %v685_v5 }
0x1078   : > { %v719_v34 = vmul.f32 %v969_v31, %v717_v20  ;;  %v754_v8 = vpop.xlane.xlu2 %753  ;;  %v694_v10 = vsel %vm691_vm14, %v693_v26, %v689_v2  ;;  %vm724_vm15 = vweird.f32 %v969_v31 }
0x1079   : > { %970 = vrcp.f32 %v754_v8  ;;  %v695_v16 = vmul.f32 %v961_v44, %v694_v10  ;;  %vm725_vm0 = vmor %vm723_vm2, %vm724_vm15  ;;  %v766_v63 = vand.u32 2147483648, %v754_v8  ;;  %v764_v54 = vand.u32 2147483647, %v754_v8 }
0x107a   : > { %v720_v39 = vsub.f32 1.0, %v719_v34  ;;  %vm760_vm6 = vweird.f32 %v754_v8 }
0x107b   : > { %v696_v13 = vmul.f32 %v695_v16, %v1501_v58  ;;  %v767_v57 = vor.u32 1.1754944e-38, %v766_v63  ;;  %vm765_vm4 = vcmp.eq.f32.partialorder %v764_v54, 8.507059e+37 }
0x107c   : > { %v721_v29 = vmul.f32 %v969_v31, %v720_v39 }
0x107d   : > { %697 = vadd.xlane.f32.xlu2 %v696_v13 }
0x107e   : > { %v722_v41 = vadd.f32 %v969_v31, %v721_v29 }
0x107f   : > { %v971_v43 = vpop.eup %970 }
0x1080   : > { %v756_v52 = vmul.f32 %v971_v43, %v754_v8  ;;  %v726_v53 = vsel %vm725_vm0, %v969_v31, %v722_v41  ;;  %vm761_vm5 = vweird.f32 %v971_v43 }
0x1081   : > { %v731_v55 = vsel %vm728_vm1, %v730_v51, %v726_v53  ;;  %vm762_vm3 = vmor %vm760_vm6, %vm761_vm5 }
0x1082   : > { %v757_v61 = vsub.f32 1.0, %v756_v52  ;;  %v732_v62 = vmul.f32 %v963_v23, %v731_v55 }
0x1084   : > { %v758_v0 = vmul.f32 %v971_v43, %v757_v61  ;;  %v733_v4 = vmul.f32 %v732_v62, %v1509_v22 }
0x1086   : > { %734 = vadd.xlane.f32.xlu2 %v733_v4  ;;  %v759_v56 = vadd.f32 %v971_v43, %v758_v0 }
0x1088   : > { %v763_v14 = vsel %vm762_vm3, %v971_v43, %v759_v56 }
0x1089   : > { %v768_v37 = vsel %vm765_vm4, %v767_v57, %v763_v14 }
0x108a   : > { %v769_v58 = vmul.f32 %v965_v59, %v768_v37 }
0x108c   : > { %v770_v21 = vmul.f32 %v769_v58, %v1513_v32 }
0x108e   : > { %771 = vadd.xlane.f32.xlu2 %v770_v21 }
0x10f0   : > { %v698_v9 = vpop.xlane.xlu2 %697 }
0x10f9   : > { %v735_v48 = vpop.xlane.xlu2 %734 }
0x10fa   : > { %v736_v11 = vadd.f32 %v735_v48, %v698_v9 }
0x1101   : > { %v772_v12 = vpop.xlane.xlu2 %771 }
0x1102   : > { %v773_v15 = vadd.f32 %v772_v12, %v736_v11 }
0x1104   : > { %775 = vst.msk [vmem:[%s1549_s2] sm:$0xff] %vm774_vm7, %v773_v15 }
0x1105 PF: > { %s18_s14 = sadd.s32 1, %s1086_s14   ;;  %s1552_s9 = smov %s1070_s10 }
0x1106   : > { %p15_p1 = scmp.ge.s32.totalorder %s18_s14, 5   ;;  %s1553_s10 = smov %s1074_s11 }
0x1107   : > { %s1554_s11 = smov %s1159_s21  ;;  %s1555_s12 = smov %s1082_s13 }
0x1108   : > { %s1556_s13 = smov %s1558_s16  ;;  %17 = sbr.rel (!%p15_p1) target bundleno = 6 (0x6), region = 89 }
0x110d   :  { %795 = vsyncpa [#allocation6], 1 }
0x110e   :  { %797 = vsyncpa [#allocation6 + $0x1], 1 }
0x110f   :  { %798 = vsyncpa [#allocation8], 1 }
0x1110   :  { %800 = vsyncpa [#allocation8 + $0x1], 1 }

</bundles_post_ra>
